<compile_context>
chip_gen: v5e
topology: v5e:2x2
jax: 0.10.0
libtpu: 0.0.40
codegen_flags: <defaults>
</compile_context>

<pallas_src>
import functools

import jax
import jax.numpy as jnp
import numpy as np
from jax import lax
from jax.experimental import pallas as pl
from jax.experimental.pallas import tpu as pltpu

P_NORM = 2  # Model(..., norm=2): L2 norm along the embedding dimension


def _log_sigmoid(x):
    # numerically stable log(sigmoid(x)) = -(max(-x, 0) + log(1 + exp(-|x|)))
    return -(jnp.maximum(-x, 0.0) + jnp.log(1.0 + jnp.exp(-jnp.abs(x))))


def transe_score_kernel(ent_ref, rel_ref, out_ref, *, num_objects, num_heads,
                        num_tails):
    """Scores `bt` batch rows per grid step.

    ent_ref : (bt, K+H+T, D)  entity-table rows: K objects (positive + negatives),
                              then H head entities, then T tail entities.
    rel_ref : (bt, H+T, D)    relation-table rows: H head relations, T tail relations.
    out_ref : (bt, 1)         per-batch-row objective (sum over K of log-sigmoid scores)
    """
    f32 = jnp.float32
    K, H, T = num_objects, num_heads, num_tails
    n_targets = H + T

    ent = ent_ref[...].astype(f32)                     # (bt, K+H+T, D)
    rel = rel_ref[...].astype(f32)                     # (bt, H+T,   D)
    obj = ent[:, :K, :]                                # (bt, K, D)
    bt = obj.shape[0]

    f2_sum = jnp.zeros((bt, K), f32)

    # Head targets:  ||h + r - obj||_2 == ||obj - (h + r)||_2
    for j in range(H):
        tgt = ent[:, K + j:K + j + 1, :] + rel[:, j:j + 1, :]           # (bt, 1, D)
        diff = obj - tgt                                                # (bt, K, D)
        d2 = jnp.sum(diff * diff, axis=-1)                              # (bt, K)
        f2_sum = f2_sum + jnp.sqrt(d2)

    # Tail targets:  ||obj + r - t||_2 == ||obj - (t - r)||_2
    for j in range(T):
        tgt = ent[:, K + H + j:K + H + j + 1, :] - rel[:, H + j:H + j + 1, :]
        diff = obj - tgt
        d2 = jnp.sum(diff * diff, axis=-1)
        f2_sum = f2_sum + jnp.sqrt(d2)

    f1 = -f2_sum / float(n_targets)                                     # (bt, K)

    # +1 for the positive object (index 0), -1 for the negatives.
    kidx = lax.broadcasted_iota(jnp.int32, f1.shape, 1)
    sgn = jnp.where(kidx == 0, 1.0, -1.0).astype(f32)

    score = jnp.sum(_log_sigmoid(f1 * sgn), axis=1, keepdims=True)      # (bt, 1)
    out_ref[...] = score.astype(out_ref.dtype)


def model_forward_pallas(entity_table, relation_table,
                         entity_batch, head_batch, head_relation_batch,
                         tail_relation_batch, tail_batch, negative_batch,
                         block_b=512, compute_dtype=jnp.bfloat16):
    """TransE forward (sum of per-row objectives) with a Pallas scoring kernel."""
    ent_tab = entity_table.astype(compute_dtype)
    rel_tab = relation_table.astype(compute_dtype)

    B = entity_batch.shape[0]
    K = 1 + negative_batch.shape[1]            # positive + negatives
    H = head_batch.shape[1]
    T = tail_batch.shape[1]
    D = entity_table.shape[1]

    # Index-space concatenation: ONE gather per table, already in the packed
    # (B, slots, D) layout the kernel consumes — no post-gather concat/combine pass.
    ent_idx = jnp.concatenate(
        [entity_batch[:, None], negative_batch, head_batch, tail_batch], axis=1)   # (B, K+H+T)
    rel_idx = jnp.concatenate(
        [head_relation_batch, tail_relation_batch], axis=1)                         # (B, H+T)

    ent_rows = jnp.take(ent_tab, ent_idx, axis=0)      # (B, K+H+T, D)
    rel_rows = jnp.take(rel_tab, rel_idx, axis=0)      # (B, H+T,   D)

    # Batch-tile size: multiple of 8 (output block sublanes); keep >= 2 blocks when
    # the batch is large enough so the "parallel" grid axis spans both v7x TensorCores.
    bt = max(8, (min(int(block_b), B) + 7) // 8 * 8)
    if B >= 32 and pl.cdiv(B, bt) < 2:
        bt = max(8, (pl.cdiv(B, 2) + 7) // 8 * 8)
    num_blocks = pl.cdiv(B, bt)
    b_pad = num_blocks * bt
    if b_pad != B:
        pad = b_pad - B
        ent_rows = jnp.pad(ent_rows, ((0, pad), (0, 0), (0, 0)))
        rel_rows = jnp.pad(rel_rows, ((0, pad), (0, 0), (0, 0)))

    kernel = functools.partial(transe_score_kernel,
                               num_objects=K, num_heads=H, num_tails=T)

    per_row = pl.pallas_call(
        kernel,
        out_shape=jax.ShapeDtypeStruct((b_pad, 1), jnp.float32),
        grid_spec=pltpu.PrefetchScalarGridSpec(
            num_scalar_prefetch=0,
            grid=(num_blocks,),
            in_specs=[
                pl.BlockSpec((bt, K + H + T, D), lambda b: (b, 0, 0)),
                pl.BlockSpec((bt, H + T, D), lambda b: (b, 0, 0)),
            ],
            out_specs=pl.BlockSpec((bt, 1), lambda b: (b, 0)),
        ),
        compiler_params=pltpu.CompilerParams(
            dimension_semantics=("parallel",),
            vmem_limit_bytes=32 * 1024 * 1024),
    )(ent_rows, rel_rows)

    # torch.sum(obj_func, 0) -> scalar (padded rows are dropped before the sum).
    return jnp.sum(per_row[:B, 0])


def model_forward_reference(entity_table, relation_table,
                            entity_batch, head_batch, head_relation_batch,
                            tail_relation_batch, tail_batch, negative_batch):
    """Pure-JAX f32 reference matching the PyTorch forward semantics exactly."""
    ent = entity_table[entity_batch]
    neg = entity_table[negative_batch]
    obj = jnp.concatenate([ent[:, None, :], neg], axis=1)                # (B, K, D)
    he = entity_table[head_batch]
    hr = relation_table[head_relation_batch]
    tr = relation_table[tail_relation_batch]
    te = entity_table[tail_batch]

    f2_head = jnp.linalg.norm(he[:, None] + hr[:, None] - obj[:, :, None],
                              ord=P_NORM, axis=3)                        # (B, K, H)
    f2_tail = jnp.linalg.norm(obj[:, :, None] + tr[:, None] - te[:, None],
                              ord=P_NORM, axis=3)                        # (B, K, T)
    f2_all = jnp.concatenate([f2_head, f2_tail], axis=2)
    f1 = -jnp.sum(f2_all, axis=2) / f2_all.shape[2]                      # (B, K)

    # torch: tmp_ones = ones(K) * -1; tmp_ones[0] = 1  ->  [+1, -1, ..., -1]
    sign = jnp.full((f1.shape[1],), -1.0, jnp.float32).at[0].set(1.0)
    obj_func = jnp.sum(_log_sigmoid(f1 * sign[None, :]), axis=1)
    return jnp.sum(obj_func, axis=0)


def _make_embedding(key, rows, dim):
    bound = 6.0 / (dim ** 0.5)
    w = jax.random.uniform(key, (rows, dim), jnp.float32, -bound, bound)
    # funcs.normalize(w, p=2, dim=1)
    nrm = jnp.maximum(jnp.linalg.norm(w, ord=P_NORM, axis=1, keepdims=True), 1e-12)
    return w / nrm


if __name__ == "__main__":
    B, D = 2, 128           # batch, embedding dim (entity_dimension == relation_dimension)
    NUM_ENT, NUM_REL = 64, 16
    H, T, NEG = 4, 4, 7     # heads / tails / negatives per positive

    key = jax.random.PRNGKey(0)
    k_ent, k_rel, kb1, kb2 = jax.random.split(key, 4)

    entity_table = _make_embedding(k_ent, NUM_ENT, D)
    relation_table = _make_embedding(k_rel, NUM_REL, D)

    def make_batch(k, b):
        kk = jax.random.split(k, 6)
        return dict(
            entity_batch=jax.random.randint(kk[0], (b,), 0, NUM_ENT),
            head_batch=jax.random.randint(kk[1], (b, H), 0, NUM_ENT),
            head_relation_batch=jax.random.randint(kk[2], (b, H), 0, NUM_REL),
            tail_relation_batch=jax.random.randint(kk[3], (b, T), 0, NUM_REL),
            tail_batch=jax.random.randint(kk[4], (b, T), 0, NUM_ENT),
            negative_batch=jax.random.randint(kk[5], (b, NEG), 0, NUM_ENT),
        )

    batch = make_batch(kb1, B)
    ref = jax.block_until_ready(
        model_forward_reference(entity_table, relation_table, **batch))

    # 1) Exact-math check: f32 kernel path vs f32 reference (tight tolerance).
    fwd_f32 = jax.jit(functools.partial(model_forward_pallas,
                                        block_b=512, compute_dtype=jnp.float32))
    out_f32 = jax.block_until_ready(fwd_f32(entity_table, relation_table, **batch))
    np.testing.assert_allclose(np.asarray(out_f32), np.asarray(ref),
                               rtol=1e-3, atol=1e-3)

    # 2) Perf path: bf16 operands (halved HBM traffic), f32 in-kernel accumulation.
    #    Tolerance loosened only for the deliberate bf16 input quantization.
    fwd_bf16 = jax.jit(functools.partial(model_forward_pallas,
                                         block_b=512, compute_dtype=jnp.bfloat16))
    out_bf16 = jax.block_until_ready(fwd_bf16(entity_table, relation_table, **batch))
    np.testing.assert_allclose(np.asarray(out_bf16), np.asarray(ref),
                               rtol=2e-2, atol=2e-1)

    # 3) Multi-block grid + batch-padding path (exercises >1 "parallel" blocks).
    batch2 = make_batch(kb2, 37)
    ref2 = jax.block_until_ready(
        model_forward_reference(entity_table, relation_table, **batch2))
    fwd_mb = jax.jit(functools.partial(model_forward_pallas,
                                       block_b=16, compute_dtype=jnp.float32))
    out2 = jax.block_until_ready(fwd_mb(entity_table, relation_table, **batch2))
    np.testing.assert_allclose(np.asarray(out2), np.asarray(ref2),
                               rtol=1e-3, atol=1e-3)

    print("KERNEL_OK")
</pallas_src>

<mosaic_0001>
module attributes {stable_mosaic.version = 11 : i64} {
  func.func @transe_score_kernel(%arg0: i32, %arg1: memref<8x16x128xf32, #tpu.memory_space<vmem>>, %arg2: memref<8x8x128xf32, #tpu.memory_space<vmem>>, %arg3: memref<8x1xf32, #tpu.memory_space<vmem>>) attributes {dimension_semantics = [#tpu.dimension_semantics<parallel>], iteration_bounds = array<i64: 1>, scalar_prefetch = 0 : i64, scratch_operands = 0 : i64, tpu.core_type = #tpu.core_type<tc>, window_params = [{transform_indices = @transform_0, window_bounds = array<i64: 8, 16, 128>}, {transform_indices = @transform_1, window_bounds = array<i64: 8, 8, 128>}, {transform_indices = @transform_2, window_bounds = array<i64: 8, 1>}]} {
    %c0 = arith.constant 0 : index
    %c0_0 = arith.constant 0 : index
    %c0_1 = arith.constant 0 : index
    %0 = vector.load %arg1[%c0, %c0_0, %c0_1] : memref<8x16x128xf32, #tpu.memory_space<vmem>>, vector<8x16x128xf32>
    %c0_2 = arith.constant 0 : index
    %c0_3 = arith.constant 0 : index
    %c0_4 = arith.constant 0 : index
    %1 = vector.load %arg2[%c0_2, %c0_3, %c0_4] : memref<8x8x128xf32, #tpu.memory_space<vmem>>, vector<8x8x128xf32>
    %2 = vector.extract_strided_slice %0 {offsets = [0, 0, 0], sizes = [8, 8, 128], strides = [1, 1, 1]} : vector<8x16x128xf32> to vector<8x8x128xf32>
    %cst = arith.constant 0.000000e+00 : f32
    %3 = vector.broadcast %cst : f32 to vector<8x8xf32>
    %4 = vector.extract_strided_slice %0 {offsets = [0, 8, 0], sizes = [8, 1, 128], strides = [1, 1, 1]} : vector<8x16x128xf32> to vector<8x1x128xf32>
    %5 = vector.extract_strided_slice %1 {offsets = [0, 0, 0], sizes = [8, 1, 128], strides = [1, 1, 1]} : vector<8x8x128xf32> to vector<8x1x128xf32>
    %6 = arith.addf %4, %5 : vector<8x1x128xf32>
    %7 = vector.broadcast %6 : vector<8x1x128xf32> to vector<8x8x128xf32>
    %8 = arith.subf %2, %7 : vector<8x8x128xf32>
    %9 = arith.mulf %8, %8 : vector<8x8x128xf32>
    %cst_5 = arith.constant dense<0.000000e+00> : vector<8x8xf32>
    %10 = vector.multi_reduction <add>, %9, %cst_5 [2] : vector<8x8x128xf32> to vector<8x8xf32>
    %11 = math.sqrt %10 : vector<8x8xf32>
    %12 = arith.addf %3, %11 : vector<8x8xf32>
    %13 = vector.extract_strided_slice %0 {offsets = [0, 9, 0], sizes = [8, 1, 128], strides = [1, 1, 1]} : vector<8x16x128xf32> to vector<8x1x128xf32>
    %14 = vector.extract_strided_slice %1 {offsets = [0, 1, 0], sizes = [8, 1, 128], strides = [1, 1, 1]} : vector<8x8x128xf32> to vector<8x1x128xf32>
    %15 = arith.addf %13, %14 : vector<8x1x128xf32>
    %16 = vector.broadcast %15 : vector<8x1x128xf32> to vector<8x8x128xf32>
    %17 = arith.subf %2, %16 : vector<8x8x128xf32>
    %18 = arith.mulf %17, %17 : vector<8x8x128xf32>
    %cst_6 = arith.constant dense<0.000000e+00> : vector<8x8xf32>
    %19 = vector.multi_reduction <add>, %18, %cst_6 [2] : vector<8x8x128xf32> to vector<8x8xf32>
    %20 = math.sqrt %19 : vector<8x8xf32>
    %21 = arith.addf %12, %20 : vector<8x8xf32>
    %22 = vector.extract_strided_slice %0 {offsets = [0, 10, 0], sizes = [8, 1, 128], strides = [1, 1, 1]} : vector<8x16x128xf32> to vector<8x1x128xf32>
    %23 = vector.extract_strided_slice %1 {offsets = [0, 2, 0], sizes = [8, 1, 128], strides = [1, 1, 1]} : vector<8x8x128xf32> to vector<8x1x128xf32>
    %24 = arith.addf %22, %23 : vector<8x1x128xf32>
    %25 = vector.broadcast %24 : vector<8x1x128xf32> to vector<8x8x128xf32>
    %26 = arith.subf %2, %25 : vector<8x8x128xf32>
    %27 = arith.mulf %26, %26 : vector<8x8x128xf32>
    %cst_7 = arith.constant dense<0.000000e+00> : vector<8x8xf32>
    %28 = vector.multi_reduction <add>, %27, %cst_7 [2] : vector<8x8x128xf32> to vector<8x8xf32>
    %29 = math.sqrt %28 : vector<8x8xf32>
    %30 = arith.addf %21, %29 : vector<8x8xf32>
    %31 = vector.extract_strided_slice %0 {offsets = [0, 11, 0], sizes = [8, 1, 128], strides = [1, 1, 1]} : vector<8x16x128xf32> to vector<8x1x128xf32>
    %32 = vector.extract_strided_slice %1 {offsets = [0, 3, 0], sizes = [8, 1, 128], strides = [1, 1, 1]} : vector<8x8x128xf32> to vector<8x1x128xf32>
    %33 = arith.addf %31, %32 : vector<8x1x128xf32>
    %34 = vector.broadcast %33 : vector<8x1x128xf32> to vector<8x8x128xf32>
    %35 = arith.subf %2, %34 : vector<8x8x128xf32>
    %36 = arith.mulf %35, %35 : vector<8x8x128xf32>
    %cst_8 = arith.constant dense<0.000000e+00> : vector<8x8xf32>
    %37 = vector.multi_reduction <add>, %36, %cst_8 [2] : vector<8x8x128xf32> to vector<8x8xf32>
    %38 = math.sqrt %37 : vector<8x8xf32>
    %39 = arith.addf %30, %38 : vector<8x8xf32>
    %40 = vector.extract_strided_slice %0 {offsets = [0, 12, 0], sizes = [8, 1, 128], strides = [1, 1, 1]} : vector<8x16x128xf32> to vector<8x1x128xf32>
    %41 = vector.extract_strided_slice %1 {offsets = [0, 4, 0], sizes = [8, 1, 128], strides = [1, 1, 1]} : vector<8x8x128xf32> to vector<8x1x128xf32>
    %42 = arith.subf %40, %41 : vector<8x1x128xf32>
    %43 = vector.broadcast %42 : vector<8x1x128xf32> to vector<8x8x128xf32>
    %44 = arith.subf %2, %43 : vector<8x8x128xf32>
    %45 = arith.mulf %44, %44 : vector<8x8x128xf32>
    %cst_9 = arith.constant dense<0.000000e+00> : vector<8x8xf32>
    %46 = vector.multi_reduction <add>, %45, %cst_9 [2] : vector<8x8x128xf32> to vector<8x8xf32>
    %47 = math.sqrt %46 : vector<8x8xf32>
    %48 = arith.addf %39, %47 : vector<8x8xf32>
    %49 = vector.extract_strided_slice %0 {offsets = [0, 13, 0], sizes = [8, 1, 128], strides = [1, 1, 1]} : vector<8x16x128xf32> to vector<8x1x128xf32>
    %50 = vector.extract_strided_slice %1 {offsets = [0, 5, 0], sizes = [8, 1, 128], strides = [1, 1, 1]} : vector<8x8x128xf32> to vector<8x1x128xf32>
    %51 = arith.subf %49, %50 : vector<8x1x128xf32>
    %52 = vector.broadcast %51 : vector<8x1x128xf32> to vector<8x8x128xf32>
    %53 = arith.subf %2, %52 : vector<8x8x128xf32>
    %54 = arith.mulf %53, %53 : vector<8x8x128xf32>
    %cst_10 = arith.constant dense<0.000000e+00> : vector<8x8xf32>
    %55 = vector.multi_reduction <add>, %54, %cst_10 [2] : vector<8x8x128xf32> to vector<8x8xf32>
    %56 = math.sqrt %55 : vector<8x8xf32>
    %57 = arith.addf %48, %56 : vector<8x8xf32>
    %58 = vector.extract_strided_slice %0 {offsets = [0, 14, 0], sizes = [8, 1, 128], strides = [1, 1, 1]} : vector<8x16x128xf32> to vector<8x1x128xf32>
    %59 = vector.extract_strided_slice %1 {offsets = [0, 6, 0], sizes = [8, 1, 128], strides = [1, 1, 1]} : vector<8x8x128xf32> to vector<8x1x128xf32>
    %60 = arith.subf %58, %59 : vector<8x1x128xf32>
    %61 = vector.broadcast %60 : vector<8x1x128xf32> to vector<8x8x128xf32>
    %62 = arith.subf %2, %61 : vector<8x8x128xf32>
    %63 = arith.mulf %62, %62 : vector<8x8x128xf32>
    %cst_11 = arith.constant dense<0.000000e+00> : vector<8x8xf32>
    %64 = vector.multi_reduction <add>, %63, %cst_11 [2] : vector<8x8x128xf32> to vector<8x8xf32>
    %65 = math.sqrt %64 : vector<8x8xf32>
    %66 = arith.addf %57, %65 : vector<8x8xf32>
    %67 = vector.extract_strided_slice %0 {offsets = [0, 15, 0], sizes = [8, 1, 128], strides = [1, 1, 1]} : vector<8x16x128xf32> to vector<8x1x128xf32>
    %68 = vector.extract_strided_slice %1 {offsets = [0, 7, 0], sizes = [8, 1, 128], strides = [1, 1, 1]} : vector<8x8x128xf32> to vector<8x1x128xf32>
    %69 = arith.subf %67, %68 : vector<8x1x128xf32>
    %70 = vector.broadcast %69 : vector<8x1x128xf32> to vector<8x8x128xf32>
    %71 = arith.subf %2, %70 : vector<8x8x128xf32>
    %72 = arith.mulf %71, %71 : vector<8x8x128xf32>
    %cst_12 = arith.constant dense<0.000000e+00> : vector<8x8xf32>
    %73 = vector.multi_reduction <add>, %72, %cst_12 [2] : vector<8x8x128xf32> to vector<8x8xf32>
    %74 = math.sqrt %73 : vector<8x8xf32>
    %75 = arith.addf %66, %74 : vector<8x8xf32>
    %cst_13 = arith.constant 0.000000e+00 : f32
    %76 = vector.broadcast %cst_13 : f32 to vector<8x8xf32>
    %77 = arith.subf %76, %75 : vector<8x8xf32>
    %cst_14 = arith.constant 8.000000e+00 : f32
    %78 = vector.broadcast %cst_14 : f32 to vector<8x8xf32>
    %79 = arith.divf %77, %78 : vector<8x8xf32>
    %80 = tpu.iota {dimensions = array<i32: 1>} : vector<8x8xi32>
    %c0_i32 = arith.constant 0 : i32
    %81 = vector.broadcast %c0_i32 : i32 to vector<8x8xi32>
    %82 = arith.cmpi eq, %80, %81 : vector<8x8xi32>
    %cst_15 = arith.constant 1.000000e+00 : f32
    %cst_16 = arith.constant -1.000000e+00 : f32
    %83 = vector.broadcast %cst_15 : f32 to vector<8x8xf32>
    %84 = vector.broadcast %cst_16 : f32 to vector<8x8xf32>
    %85 = arith.select %82, %83, %84 : vector<8x8xi1>, vector<8x8xf32>
    %86 = arith.mulf %79, %85 : vector<8x8xf32>
    %cst_17 = arith.constant 0.000000e+00 : f32
    %87 = vector.broadcast %cst_17 : f32 to vector<8x8xf32>
    %88 = arith.subf %87, %86 : vector<8x8xf32>
    %cst_18 = arith.constant 0.000000e+00 : f32
    %89 = vector.broadcast %cst_18 : f32 to vector<8x8xf32>
    %90 = arith.maximumf %88, %89 : vector<8x8xf32>
    %91 = math.absf %86 : vector<8x8xf32>
    %cst_19 = arith.constant 0.000000e+00 : f32
    %92 = vector.broadcast %cst_19 : f32 to vector<8x8xf32>
    %93 = arith.subf %92, %91 : vector<8x8xf32>
    %94 = math.exp %93 : vector<8x8xf32>
    %cst_20 = arith.constant 1.000000e+00 : f32
    %95 = vector.broadcast %cst_20 : f32 to vector<8x8xf32>
    %96 = arith.addf %95, %94 : vector<8x8xf32>
    %97 = math.log %96 : vector<8x8xf32>
    %98 = arith.addf %90, %97 : vector<8x8xf32>
    %cst_21 = arith.constant 0.000000e+00 : f32
    %99 = vector.broadcast %cst_21 : f32 to vector<8x8xf32>
    %100 = arith.subf %99, %98 : vector<8x8xf32>
    %cst_22 = arith.constant dense<0.000000e+00> : vector<8xf32>
    %101 = vector.multi_reduction <add>, %100, %cst_22 [1] : vector<8x8xf32> to vector<8xf32>
    %102 = vector.shape_cast %101 : vector<8xf32> to vector<8x1xf32>
    %c0_23 = arith.constant 0 : index
    %c0_24 = arith.constant 0 : index
    %103 = vector.load %arg3[%c0_23, %c0_24] : memref<8x1xf32, #tpu.memory_space<vmem>>, vector<8x1xf32>
    tpu.vector_store %arg3[%c0_23, %c0_24], %102 {strides = array<i32>} : memref<8x1xf32, #tpu.memory_space<vmem>>, vector<8x1xf32>,
    return
  }
  func.func @transform_0(%arg0: i32) -> (i32, i32, i32) {
    %c0_i32 = arith.constant 0 : i32
    %c0_i32_0 = arith.constant 0 : i32
    %c0_i32_1 = arith.constant 0 : i32
    return %arg0, %c0_i32, %c0_i32_0 : i32, i32, i32
  }
  func.func @transform_1(%arg0: i32) -> (i32, i32, i32) {
    %c0_i32 = arith.constant 0 : i32
    %c0_i32_0 = arith.constant 0 : i32
    %c0_i32_1 = arith.constant 0 : i32
    return %arg0, %c0_i32, %c0_i32_0 : i32, i32, i32
  }
  func.func @transform_2(%arg0: i32) -> (i32, i32) {
    %c0_i32 = arith.constant 0 : i32
    %c0_i32_0 = arith.constant 0 : i32
    return %arg0, %c0_i32 : i32, i32
  }
}

</mosaic_0001>

<bundles_post_ra>
// kernel: model_forward_pallas.1
= control target key start
LH: loop header
LB: loop body
LE: loop exit
PB: predicated region body
PF: predicated region fallthrough
CT: control target
= control target key end

     0   :  { %s3054_s0 = inlined_call_operand.vmem [shape: f32[8,16,128], index: 0, kind: input, shape index: {}]   ;;  %s3055_s1 = inlined_call_operand.vmem [shape: f32[8,8,128], index: 1, kind: input, shape index: {}]   ;;  %s3056_s2 = inlined_call_operand.vmem [shape: f32[8,1], index: 2, kind: output, shape index: {}]  }
   0x1   :  { %v1589_v0 = vld [vmem:[%s3054_s0 + $0x48] sm:$0xff]  ;;  %v1594_v1 = vld [vmem:[%s3055_s1 + $0x20] sm:$0xff]  ;;  %v1608_v4 = vld [vmem:[%s3055_s1 + $0x10] sm:$0xff] }
   0x2   :  { %v1598_v2 = vadd.f32 %v1594_v1, %v1589_v0  ;;  %v1603_v3 = vld [vmem:[%s3054_s0 + $0x28] sm:$0xff]  ;;  %v1613_v5 = vld [vmem:[%s3054_s0 + $0x40] sm:$0xff]  ;;  %v1642_v12 = vld [vmem:[%s3054_s0 + $0x58] sm:$0xff] }
   0x3   :  { %v1617_v6 = vadd.f32 %v1608_v4, %v1603_v3  ;;  %v1622_v7 = vld [vmem:[%s3054_s0 + $0x8] sm:$0xff]  ;;  %v1627_v8 = vld [vmem:[%s3055_s1] sm:$0xff]  ;;  %v1662_v17 = vld [vmem:[%s3054_s0 + $0x38] sm:$0xff] }
   0x4   :  { %v47_v9 = vperm.slane %v1598_v2, 0  ;;  %v1633_v10 = vld [vmem:[%s3054_s0 + $0x20] sm:$0xff]  ;;  %v1637_v11 = vadd.f32 %v1627_v8, %v1622_v7  ;;  %v1647_v13 = vld [vmem:[%s3055_s1 + $0x28] sm:$0xff]  ;;  %v1667_v18 = vld [vmem:[%s3055_s1 + $0x18] sm:$0xff] }
   0x5   :  { %v45_v14 = vperm.slane %v1617_v6, 0  ;;  %v1653_v15 = vld [vmem:[%s3054_s0] sm:$0xff]  ;;  %v1657_v16 = vadd.f32 %v1647_v13, %v1642_v12  ;;  %v1673_v21 = vadd.f32 %v1667_v18, %v1662_v17  ;;  %v1678_v22 = vld [vmem:[%s3054_s0 + $0x18] sm:$0xff]  ;;  %v1683_v23 = vld [vmem:[%s3055_s1 + $0x8] sm:$0xff]  ;;  %v189_v59 = vperm.slane %v1617_v6, 1 }
   0x6   :  { %v55_v19 = vsub.f32 %v1613_v5, %v47_v9  ;;  %v43_v20 = vperm.slane %v1637_v11, 0  ;;  %v1689_v25 = vld [vmem:[%s3054_s0 + $0x50] sm:$0xff]  ;;  %v1694_v27 = vadd.f32 %v1683_v23, %v1678_v22  ;;  %v1706_v32 = vld [vmem:[%s3054_s0 + $0x78] sm:$0xff]  ;;  %v1722_v37 = vld [vmem:[%s3054_s0 + $0x68] sm:$0xff]  ;;  %v187_v46 = vperm.slane %v1637_v11, 1 }
   0x7   :  { %v53_v24 = vsub.f32 %v1633_v10, %v45_v14  ;;  %v48_v26 = vperm.slane %v1657_v16, 0  ;;  %v1700_v30 = vld [vmem:[%s3054_s0 + $0x30] sm:$0xff]  ;;  %v46_v31 = vperm.slane %v1673_v21, 0  ;;  %v1711_v33 = vld [vmem:[%s3055_s1 + $0x38] sm:$0xff]  ;;  %v1751_v52 = vld [vmem:[%s3054_s0 + $0x60] sm:$0xff]  ;;  %v190_v57 = vperm.slane %v1673_v21, 1 }
   0x8   :  { %v63_v28 = vmul.f32 %v55_v19, %v55_v19  ;;  %v51_v29 = vsub.f32 %v1653_v15, %v43_v20  ;;  %v1716_v35 = vld [vmem:[%s3054_s0 + $0x10] sm:$0xff]  ;;  %v44_v36 = vperm.slane %v1694_v27, 0  ;;  %v1733_v42 = vadd.f32 %v1711_v33, %v1706_v32 }
   0x9   :  { %v61_v34 = vmul.f32 %v53_v24, %v53_v24  ;;  %v1727_v38 = vld [vmem:[%s3055_s1 + $0x30] sm:$0xff]  ;;  %v56_v40 = vsub.f32 %v1689_v25, %v48_v26  ;;  %v54_v41 = vsub.f32 %v1700_v30, %v46_v31  ;;  %v195_v53 = vsub.f32 %v1653_v15, %v187_v46 }
   0xa   :  { %75 = vadd.xlane.f32.xlu2 %v63_v28  ;;  %v59_v39 = vmul.f32 %v51_v29, %v51_v29  ;;  %v52_v43 = vsub.f32 %v1716_v35, %v44_v36  ;;  %v1738_v44 = vadd.f32 %v1727_v38, %v1722_v37  ;;  %v50_v48 = vperm.slane %v1733_v42, 0  ;;  %v1745_v50 = vld [vmem:[%s3054_s0 + $0x70] sm:$0xff] }
   0xb   :  { %71 = vadd.xlane.f32.xlu1 %v61_v34  ;;  %v64_v45 = vmul.f32 %v56_v40, %v56_v40  ;;  %v62_v47 = vmul.f32 %v54_v41, %v54_v41  ;;  %v203_v56 = vmul.f32 %v195_v53, %v195_v53  ;;  %v188_v61 = vperm.slane %v1694_v27, 1 }
   0xc   :  { %67 = vadd.xlane.f32.xlu0 %v59_v39  ;;  %v60_v49 = vmul.f32 %v52_v43, %v52_v43  ;;  %v49_v51 = vperm.slane %v1738_v44, 0  ;;  %v58_v54 = vsub.f32 %v1745_v50, %v50_v48  ;;  %v198_v62 = vsub.f32 %v1700_v30, %v190_v57 }
   0xd   :  { %v197_v63 = vsub.f32 %v1633_v10, %v189_v59  ;;  %v196_v9 = vsub.f32 %v1716_v35, %v188_v61  ;;  %v193_v19 = vperm.slane %v1738_v44, 1  ;;  %v192_v24 = vperm.slane %v1657_v16, 1 }
   0xe   :  { %v57_v55 = vsub.f32 %v1751_v52, %v49_v51  ;;  %v66_v58 = vmul.f32 %v58_v54, %v58_v54  ;;  %v206_v14 = vmul.f32 %v198_v62, %v198_v62  ;;  %v191_v28 = vperm.slane %v1598_v2, 1 }
   0xf   :  { %v205_v20 = vmul.f32 %v197_v63, %v197_v63  ;;  %v204_v26 = vmul.f32 %v196_v9, %v196_v9  ;;  %v201_v29 = vsub.f32 %v1751_v52, %v193_v19  ;;  %v200_v31 = vsub.f32 %v1689_v25, %v192_v24 }
  0x10   :  { %v65_v60 = vmul.f32 %v57_v55, %v57_v55  ;;  %v199_v34 = vsub.f32 %v1613_v5, %v191_v28  ;;  %v332_v39 = vperm.slane %v1694_v27, 2  ;;  %v331_v41 = vperm.slane %v1637_v11, 2 }
  0x11   :  { %v209_v36 = vmul.f32 %v201_v29, %v201_v29  ;;  %v208_v40 = vmul.f32 %v200_v31, %v200_v31  ;;  %v335_v53 = vperm.slane %v1598_v2, 2  ;;  %v334_v55 = vperm.slane %v1673_v21, 2 }
  0x12   :  { %77 = vadd.xlane.f32.xlu2 %v64_v45  ;;  %v207_v43 = vmul.f32 %v199_v34, %v199_v34  ;;  %v194_v45 = vperm.slane %v1733_v42, 1  ;;  %v340_v46 = vsub.f32 %v1716_v35, %v332_v39  ;;  %v333_v57 = vperm.slane %v1617_v6, 2 }
  0x13   :  { %73 = vadd.xlane.f32.xlu1 %v62_v47  ;;  %v339_v47 = vsub.f32 %v1653_v15, %v331_v41  ;;  %v342_v59 = vsub.f32 %v1700_v30, %v334_v55  ;;  %v338_v61 = vperm.slane %v1733_v42, 2  ;;  %v337_v63 = vperm.slane %v1738_v44, 2 }
  0x14   :  { %69 = vadd.xlane.f32.xlu0 %v60_v49  ;;  %v202_v48 = vsub.f32 %v1745_v50, %v194_v45  ;;  %v1776_v49 = vsub.f32 %v1622_v7, %v1627_v8  ;;  %v348_v51 = vmul.f32 %v340_v46, %v340_v46  ;;  %v1786_v7 = vsub.f32 %v1603_v3, %v1608_v4 }
  0x15   :  { %v347_v54 = vmul.f32 %v339_v47, %v339_v47  ;;  %v350_v62 = vmul.f32 %v342_v59, %v342_v59  ;;  %v346_v19 = vsub.f32 %v1745_v50, %v338_v61  ;;  %v1796_v3 = vsub.f32 %v1662_v17, %v1667_v18 }
  0x16   :  { %v476_v29 = vperm.slane %v1694_v27, 3  ;;  %v475_v34 = vperm.slane %v1637_v11, 3  ;;  %v1804_v39 = vsub.f32 %v1678_v22, %v1683_v23  ;;  %v627_v41 = vperm.slane %v1776_v49, 4 }
  0x17   :  { %v354_v4 = vmul.f32 %v346_v19, %v346_v19  ;;  %v480_v47 = vperm.slane %v1657_v16, 3 }
  0x18   :  { %v484_v17 = vsub.f32 %v1716_v35, %v476_v29  ;;  %v483_v18 = vsub.f32 %v1653_v15, %v475_v34  ;;  %v635_v22 = vsub.f32 %v1653_v15, %v627_v41 }
  0x1a   :  { %211 = vadd.xlane.f32.xlu2 %v203_v56  ;;  %v210_v56 = vmul.f32 %v202_v48, %v202_v48  ;;  %v492_v27 = vmul.f32 %v484_v17, %v484_v17  ;;  %v491_v11 = vmul.f32 %v483_v18, %v483_v18  ;;  %v643_v48 = vmul.f32 %v635_v22, %v635_v22 }
  0x1b   :  { %81 = vadd.xlane.f32.xlu1 %v66_v58  ;;  %v343_v58 = vsub.f32 %v1613_v5, %v335_v53  ;;  %v482_v17 = vperm.slane %v1733_v42, 3 }
  0x1c   :  { %79 = vadd.xlane.f32.xlu0 %v65_v60  ;;  %v341_v60 = vsub.f32 %v1633_v10, %v333_v57 }
  0x1d   :  { %v351_v8 = vmul.f32 %v343_v58, %v343_v58  ;;  %v772_v58 = vperm.slane %v1804_v39, 5 }
  0x1e   :  { %v349_v9 = vmul.f32 %v341_v60, %v341_v60 }
  0x22   :  { %217 = vadd.xlane.f32.xlu2 %v206_v14  ;;  %v336_v14 = vperm.slane %v1657_v16, 2  ;;  %v771_v16 = vperm.slane %v1776_v49, 5 }
  0x23   :  { %215 = vadd.xlane.f32.xlu1 %v205_v20  ;;  %v345_v20 = vsub.f32 %v1751_v52, %v337_v63 }
  0x24   :  { %213 = vadd.xlane.f32.xlu0 %v204_v26  ;;  %v344_v24 = vsub.f32 %v1689_v25, %v336_v14  ;;  %v477_v26 = vperm.slane %v1617_v6, 3  ;;  %v779_v61 = vsub.f32 %v1653_v15, %v771_v16  ;;  %v773_v14 = vperm.slane %v1786_v7, 5 }
  0x25   :  { %v353_v28 = vmul.f32 %v345_v20, %v345_v20 }
  0x26   :  { %v352_v31 = vmul.f32 %v344_v24, %v344_v24  ;;  %v787_v19 = vmul.f32 %v779_v61, %v779_v61 }
  0x2a   :  { %223 = vadd.xlane.f32.xlu2 %v209_v36  ;;  %v485_v36 = vsub.f32 %v1633_v10, %v477_v26  ;;  %v781_v26 = vsub.f32 %v1633_v10, %v773_v14 }
  0x2b   :  { %221 = vadd.xlane.f32.xlu1 %v208_v40  ;;  %v628_v40 = vperm.slane %v1804_v39, 4 }
  0x2c   :  { %219 = vadd.xlane.f32.xlu0 %v207_v43  ;;  %v493_v6 = vmul.f32 %v485_v36, %v485_v36  ;;  %v478_v43 = vperm.slane %v1673_v21, 3  ;;  %v488_v21 = vsub.f32 %v1689_v25, %v480_v47  ;;  %v789_v29 = vmul.f32 %v781_v26, %v781_v26 }
  0x2d   :  { %v636_v45 = vsub.f32 %v1716_v35, %v628_v40 }
  0x2e   :  { %v486_v23 = vsub.f32 %v1700_v30, %v478_v43  ;;  %v496_v57 = vmul.f32 %v488_v21, %v488_v21  ;;  %v915_v43 = vperm.slane %v1776_v49, 6 }
  0x2f   :  { %v644_v46 = vmul.f32 %v636_v45, %v636_v45 }
  0x30   :  { %v494_v53 = vmul.f32 %v486_v23, %v486_v23  ;;  %v923_v22 = vsub.f32 %v1653_v15, %v915_v43  ;;  %v1061_v43 = vperm.slane %v1786_v7, 7 }
  0x32   :  { %357 = vadd.xlane.f32.xlu2 %v348_v51  ;;  %v629_v51 = vperm.slane %v1786_v7, 4 }
  0x33   :  { %355 = vadd.xlane.f32.xlu1 %v347_v54  ;;  %v479_v54 = vperm.slane %v1598_v2, 3  ;;  %v780_v2 = vsub.f32 %v1716_v35, %v772_v58  ;;  %v1059_v58 = vperm.slane %v1776_v49, 7 }
  0x34   :  { %225 = vadd.xlane.f32.xlu0 %v210_v56  ;;  %v637_v55 = vsub.f32 %v1633_v10, %v629_v51  ;;  %v931_v51 = vmul.f32 %v923_v22, %v923_v22 }
  0x35   :  { %v487_v56 = vsub.f32 %v1613_v5, %v479_v54  ;;  %v1067_v61 = vsub.f32 %v1653_v15, %v1059_v58 }
  0x36   :  { %v645_v59 = vmul.f32 %v637_v55, %v637_v55 }
  0x37   :  { %v495_v60 = vmul.f32 %v487_v56, %v487_v56 }
  0x3a   :  { %363 = vadd.xlane.f32.xlu2 %v351_v8  ;;  %v630_v8 = vperm.slane %v1796_v3, 4 }
  0x3b   :  { %361 = vadd.xlane.f32.xlu1 %v350_v62  ;;  %v1827_v62 = vsub.f32 %v1589_v0, %v1594_v1  ;;  %v1837_v0 = vsub.f32 %v1642_v12, %v1647_v13  ;;  %v490_v13 = vsub.f32 %v1745_v50, %v482_v17 }
  0x3c   :  { %359 = vadd.xlane.f32.xlu0 %v349_v9  ;;  %v638_v63 = vsub.f32 %v1700_v30, %v630_v8  ;;  %v788_v9 = vmul.f32 %v780_v2, %v780_v2 }
  0x3d   :  { %v631_v20 = vperm.slane %v1827_v62, 4  ;;  %v632_v36 = vperm.slane %v1837_v0, 4  ;;  %v498_v42 = vmul.f32 %v490_v13, %v490_v13  ;;  %v776_v8 = vperm.slane %v1837_v0, 5 }
  0x3e   :  { %v646_v24 = vmul.f32 %v638_v63, %v638_v63  ;;  %v919_v14 = vperm.slane %v1827_v62, 6 }
  0x3f   :  { %v640_v12 = vsub.f32 %v1689_v25, %v632_v36  ;;  %v784_v49 = vsub.f32 %v1689_v25, %v776_v8 }
  0x41   :  { %v648_v41 = vmul.f32 %v640_v12, %v640_v12  ;;  %v792_v17 = vmul.f32 %v784_v49, %v784_v49 }
  0x42   :  { %369 = vadd.xlane.f32.xlu2 %v354_v4  ;;  %v481_v4 = vperm.slane %v1738_v44, 3 }
  0x43   :  { %367 = vadd.xlane.f32.xlu1 %v353_v28  ;;  %v639_v28 = vsub.f32 %v1613_v5, %v631_v20 }
  0x44   :  { %365 = vadd.xlane.f32.xlu0 %v352_v31  ;;  %v489_v1 = vsub.f32 %v1751_v52, %v481_v4  ;;  %v774_v31 = vperm.slane %v1796_v3, 5 }
  0x45   :  { %v647_v34 = vmul.f32 %v639_v28, %v639_v28 }
  0x46   :  { %v497_v44 = vmul.f32 %v489_v1, %v489_v1  ;;  %v782_v18 = vsub.f32 %v1700_v30, %v774_v31 }
  0x48   :  { %v790_v40 = vmul.f32 %v782_v18, %v782_v18  ;;  %v927_v18 = vsub.f32 %v1613_v5, %v919_v14 }
  0x4a   :  { %503 = vadd.xlane.f32.xlu2 %v493_v6  ;;  %v1846_v6 = vsub.f32 %v1722_v37, %v1727_v38  ;;  %v1856_v37 = vsub.f32 %v1706_v32, %v1711_v33 }
  0x4b   :  { %501 = vadd.xlane.f32.xlu1 %v492_v27 }
  0x4c   :  { %499 = vadd.xlane.f32.xlu0 %v491_v11  ;;  %v633_v27 = vperm.slane %v1846_v6, 4  ;;  %v916_v11 = vperm.slane %v1804_v39, 6  ;;  %v777_v63 = vperm.slane %v1846_v6, 5 }
  0x4e   :  { %v641_v45 = vsub.f32 %v1751_v52, %v633_v27  ;;  %v924_v38 = vsub.f32 %v1716_v35, %v916_v11  ;;  %v785_v36 = vsub.f32 %v1751_v52, %v777_v63  ;;  %v778_v27 = vperm.slane %v1856_v37, 5 }
  0x4f   :  { %v920_v11 = vperm.slane %v1837_v0, 6 }
  0x50   :  { %v649_v23 = vmul.f32 %v641_v45, %v641_v45  ;;  %v932_v47 = vmul.f32 %v924_v38, %v924_v38 }
  0x52   :  { %653 = vadd.xlane.f32.xlu2 %v644_v46  ;;  %v634_v46 = vperm.slane %v1856_v37, 4 }
  0x53   :  { %651 = vadd.xlane.f32.xlu1 %v643_v48  ;;  %v917_v48 = vperm.slane %v1786_v7, 6 }
  0x54   :  { %505 = vadd.xlane.f32.xlu0 %v494_v53  ;;  %v775_v53 = vperm.slane %v1827_v62, 5  ;;  %v642_v54 = vsub.f32 %v1745_v50, %v634_v46 }
  0x55   :  { %v925_v32 = vsub.f32 %v1633_v10, %v917_v48 }
  0x56   :  { %v783_v33 = vsub.f32 %v1613_v5, %v775_v53  ;;  %v650_v56 = vmul.f32 %v642_v54, %v642_v54  ;;  %v786_v53 = vsub.f32 %v1745_v50, %v778_v27 }
  0x57   :  { %v933_v16 = vmul.f32 %v925_v32, %v925_v32 }
  0x5a   :  { %509 = vadd.xlane.f32.xlu2 %v496_v57  ;;  %v918_v57 = vperm.slane %v1796_v3, 6 }
  0x5b   :  { %655 = vadd.xlane.f32.xlu1 %v645_v59 }
  0x5c   :  { %507 = vadd.xlane.f32.xlu0 %v495_v60  ;;  %v791_v60 = vmul.f32 %v783_v33, %v783_v33  ;;  %v926_v2 = vsub.f32 %v1700_v30, %v918_v57  ;;  %v928_v33 = vsub.f32 %v1689_v25, %v920_v11 }
  0x5e   :  { %v934_v1 = vmul.f32 %v926_v2, %v926_v2 }
  0x62   :  { %797 = vadd.xlane.f32.xlu2 %v788_v9 }
  0x63   :  { %795 = vadd.xlane.f32.xlu1 %v787_v19  ;;  %v1060_v19 = vperm.slane %v1804_v39, 7 }
  0x64   :  { %657 = vadd.xlane.f32.xlu0 %v646_v24 }
  0x65   :  { %v1068_v12 = vsub.f32 %v1716_v35, %v1060_v19  ;;  %v935_v35 = vmul.f32 %v927_v18, %v927_v18 }
  0x6a   :  { %799 = vadd.xlane.f32.xlu2 %v789_v29  ;;  %v1075_v29 = vmul.f32 %v1067_v61, %v1067_v61 }
  0x6b   :  { %659 = vadd.xlane.f32.xlu1 %v647_v34 }
  0x6c   :  { %511 = vadd.xlane.f32.xlu0 %v497_v44 }
  0x72   :  { %801 = vadd.xlane.f32.xlu2 %v790_v40 }
  0x73   :  { %661 = vadd.xlane.f32.xlu1 %v648_v41 }
  0x74   :  { %513 = vadd.xlane.f32.xlu0 %v498_v42  ;;  %v793_v42 = vmul.f32 %v785_v36, %v785_v36  ;;  %v1062_v36 = vperm.slane %v1796_v3, 7 }
  0x7a   :  { %663 = vadd.xlane.f32.xlu2 %v649_v23  ;;  %v1076_v23 = vmul.f32 %v1068_v12, %v1068_v12 }
  0x7b   :  { %941 = vadd.xlane.f32.xlu1 %v932_v47 }
  0x7c   :  { %939 = vadd.xlane.f32.xlu0 %v931_v51 }
  0x7d   :  { %v1866_v21 = vpop.xlane.xlu2 %75 }
  0x7e   :  { %1406 = vrsqrt.f32 %v1866_v21  ;;  %v1869_v55 = vpop.xlane.xlu1 %71  ;;  %vm138_vm0 = vcmp.eq.f32.partialorder %v1866_v21, inf  ;;  %v141_v54 = vand.u32 2147483648, %v1866_v21  ;;  %vm140_vm2 = vcmp.eq.f32.partialorder %v1866_v21, 0.0 }
  0x7f   :  { %1408 = vrsqrt.f32 %v1869_v55  ;;  %v1874_v59 = vpop.xlane.xlu0 %67  ;;  %v117_v57 = vand.u32 2147483648, %v1869_v55  ;;  %vm114_vm1 = vcmp.eq.f32.partialorder %v1869_v55, inf  ;;  %vm116_vm3 = vcmp.eq.f32.partialorder %v1869_v55, 0.0 }
  0x80   :  { %1410 = vrsqrt.f32 %v1874_v59  ;;  %v93_v14 = vand.u32 2147483648, %v1874_v59  ;;  %vm90_vm4 = vcmp.eq.f32.partialorder %v1874_v59, inf  ;;  %vm92_vm7 = vcmp.eq.f32.partialorder %v1874_v59, 0.0 }
  0x82   :  { %665 = vadd.xlane.f32.xlu2 %v650_v56 }
  0x83   :  { %943 = vadd.xlane.f32.xlu1 %v933_v16 }
  0x84   :  { %v1407_v9 = vpop.eup %1406  ;;  %803 = vadd.xlane.f32.xlu0 %v791_v60  ;;  %v1069_v60 = vsub.f32 %v1633_v10, %v1061_v43  ;;  %v921_v10 = vperm.slane %v1846_v6, 6 }
  0x85   :  { %v1409_v20 = vpop.eup %1408  ;;  %v132_v24 = vmul.f32 %v1407_v9, %v1866_v21  ;;  %v1885_v4 = vpop.xlane.xlu2 %77 }
  0x86   :  { %v1887_v26 = vpop.eup %1410  ;;  %v108_v15 = vmul.f32 %v1409_v20, %v1869_v55  ;;  %1412 = vrsqrt.f32 %v1885_v4  ;;  %v1891_v28 = vpop.xlane.xlu1 %73  ;;  %vm150_vm5 = vcmp.eq.f32.partialorder %v1885_v4, inf  ;;  %vm152_vm6 = vcmp.eq.f32.partialorder %v1885_v4, 0.0 }
  0x87   :  { %v133_v31 = vmul.f32 %v1407_v9, %v132_v24  ;;  %v84_v34 = vmul.f32 %v1887_v26, %v1874_v59  ;;  %1414 = vrsqrt.f32 %v1891_v28  ;;  %v1896_v39 = vpop.xlane.xlu0 %69  ;;  %v794_v24 = vmul.f32 %v786_v53, %v786_v53 }
  0x88   :  { %v109_v44 = vmul.f32 %v1409_v20, %v108_v15  ;;  %1416 = vrsqrt.f32 %v1896_v39  ;;  %v929_v11 = vsub.f32 %v1751_v52, %v921_v10  ;;  %vm126_vm8 = vcmp.eq.f32.partialorder %v1891_v28, inf }
  0x89   :  { %v134_v13 = vmul.f32 0.5, %v133_v31  ;;  %v85_v40 = vmul.f32 %v1887_v26, %v84_v34  ;;  %v1077_v31 = vmul.f32 %v1069_v60, %v1069_v60  ;;  %v1063_v34 = vperm.slane %v1827_v62, 7 }
  0x8a   :  { %v110_v41 = vmul.f32 0.5, %v109_v44  ;;  %1083 = vadd.xlane.f32.xlu2 %v1075_v29  ;;  %v936_v29 = vmul.f32 %v928_v33, %v928_v33  ;;  %vm102_vm9 = vcmp.eq.f32.partialorder %v1896_v39, inf  ;;  %v937_v60 = vmul.f32 %v929_v11, %v929_v11 }
  0x8b   :  { %945 = vadd.xlane.f32.xlu1 %v934_v1  ;;  %v135_v38 = vsub.f32 1.5, %v134_v13  ;;  %v86_v22 = vmul.f32 0.5, %v85_v40  ;;  %vm128_vm10 = vcmp.eq.f32.partialorder %v1891_v28, 0.0  ;;  %vm104_vm11 = vcmp.eq.f32.partialorder %v1896_v39, 0.0 }
  0x8c   :  { %v1413_v45 = vpop.eup %1412  ;;  %805 = vadd.xlane.f32.xlu0 %v792_v17  ;;  %v111_v47 = vsub.f32 1.5, %v110_v41 }
  0x8d   :  { %v1906_v46 = vpop.eup %1414  ;;  %v144_v48 = vmul.f32 %v1413_v45, %v1885_v4  ;;  %v1910_v51 = vpop.xlane.xlu2 %211  ;;  %v136_v8 = vmul.f32 %v1407_v9, %v135_v38  ;;  %v87_v2 = vsub.f32 1.5, %v86_v22 }
  0x8e   :  { %v120_v7 = vmul.f32 %v1906_v46, %v1891_v28  ;;  %v1916_v32 = vpop.xlane.xlu1 %81  ;;  %1418 = vrsqrt.f32 %v1910_v51  ;;  %v1417_v56 = vpop.eup %1416  ;;  %v112_v49 = vmul.f32 %v1409_v20, %v111_v47  ;;  %v105_v47 = vand.u32 2147483648, %v1896_v39 }
  0x8f   :  { %v145_v58 = vmul.f32 %v1413_v45, %v144_v48  ;;  %1420 = vrsqrt.f32 %v1916_v32  ;;  %v1922_v16 = vpop.xlane.xlu0 %79  ;;  %v96_v63 = vmul.f32 %v1417_v56, %v1896_v39  ;;  %v137_v44 = vmul.f32 %v136_v8, %v1866_v21 }
  0x90   :  { %v121_v61 = vmul.f32 %v1906_v46, %v120_v7  ;;  %v88_v17 = vmul.f32 %v1887_v26, %v87_v2  ;;  %v113_v13 = vmul.f32 %v112_v49, %v1869_v55  ;;  %1422 = vrsqrt.f32 %v1922_v16 }
  0x91   :  { %v146_v19 = vmul.f32 0.5, %v145_v58  ;;  %v97_v1 = vmul.f32 %v1417_v56, %v96_v63  ;;  %v1971_v8 = vsub.f32 %v1700_v30, %v1062_v36  ;;  %vm234_vm12 = vcmp.eq.f32.partialorder %v1910_v51, inf }
  0x92   :  { %v122_v15 = vmul.f32 0.5, %v121_v61  ;;  %947 = vadd.xlane.f32.xlu2 %v935_v35  ;;  %v139_v35 = vsel %vm138_vm0, %v1866_v21, %v137_v44  ;;  %v115_v48 = vsel %vm114_vm1, %v1869_v55, %v113_v13  ;;  %v89_v53 = vmul.f32 %v88_v17, %v1874_v59 }
  0x93   :  { %v147_v9 = vsub.f32 1.5, %v146_v19  ;;  %807 = vadd.xlane.f32.xlu1 %v793_v42  ;;  %v98_v18 = vmul.f32 0.5, %v97_v1  ;;  %v153_v42 = vand.u32 2147483648, %v1885_v4  ;;  %v1986_v30 = vsel %vm116_vm3, %v117_v57, %v115_v48 }
  0x94   :  { %v1419_v20 = vpop.eup %1418  ;;  %1085 = vadd.xlane.f32.xlu0 %v1076_v23  ;;  %v123_v40 = vsub.f32 1.5, %v122_v15  ;;  %v129_v23 = vand.u32 2147483648, %v1891_v28  ;;  %v91_v19 = vsel %vm90_vm4, %v1874_v59, %v89_v53  ;;  %vm236_vm13 = vcmp.eq.f32.partialorder %v1910_v51, 0.0 }
  0x95   :  { %v1938_v12 = vpop.eup %1420  ;;  %v228_v62 = vmul.f32 %v1419_v20, %v1910_v51  ;;  %v148_v3 = vmul.f32 %v1413_v45, %v147_v9  ;;  %v99_v27 = vsub.f32 1.5, %v98_v18  ;;  %v1946_v41 = vpop.xlane.xlu2 %217  ;;  %v1071_v45 = vsub.f32 %v1613_v5, %v1063_v34 }
  0x96   :  { %v1944_v26 = vpop.xlane.xlu1 %215  ;;  %v168_v43 = vmul.f32 %v1938_v12, %v1916_v32  ;;  %v124_v5 = vmul.f32 %v1906_v46, %v123_v40  ;;  %v1423_v2 = vpop.eup %1422  ;;  %v94_v34 = vsel %vm92_vm7, %v93_v14, %v91_v19  ;;  %vm270_vm0 = vcmp.eq.f32.partialorder %v1946_v41, inf }
  0x97   :  { %v229_v38 = vmul.f32 %v1419_v20, %v228_v62  ;;  %v1953_v22 = vpop.xlane.xlu0 %213  ;;  %1424 = vrsqrt.f32 %v1944_v26  ;;  %v149_v33 = vmul.f32 %v148_v3, %v1885_v4  ;;  %v100_v58 = vmul.f32 %v1417_v56, %v99_v27 }
  0x98   :  { %v169_v61 = vmul.f32 %v1938_v12, %v168_v43  ;;  %1426 = vrsqrt.f32 %v1946_v41  ;;  %v1079_v46 = vmul.f32 %v1071_v45, %v1071_v45  ;;  %v1980_v56 = vsel %vm140_vm2, %v141_v54, %v139_v35 }
  0x99   :  { %v230_v7 = vmul.f32 0.5, %v229_v38  ;;  %v156_v49 = vmul.f32 %v1423_v2, %v1922_v16  ;;  %v125_v21 = vmul.f32 %v124_v5, %v1891_v28  ;;  %v151_v55 = vsel %vm150_vm5, %v1885_v4, %v149_v33 }
  0x9a   :  { %949 = vadd.xlane.f32.xlu2 %v936_v29  ;;  %v101_v57 = vmul.f32 %v100_v58, %v1896_v39  ;;  %1428 = vrsqrt.f32 %v1953_v22  ;;  %v170_v10 = vmul.f32 0.5, %v169_v61  ;;  %v2016_v18 = vsel %vm152_vm6, %v153_v42, %v151_v55 }
  0x9b   :  { %v231_v63 = vsub.f32 1.5, %v230_v7  ;;  %809 = vadd.xlane.f32.xlu1 %v794_v24  ;;  %v237_v24 = vand.u32 2147483648, %v1910_v51  ;;  %v157_v1 = vmul.f32 %v1423_v2, %v156_v49  ;;  %v127_v13 = vsel %vm126_vm8, %v1891_v28, %v125_v21 }
  0x9c   :  { %1087 = vadd.xlane.f32.xlu0 %v1077_v31  ;;  %v103_v62 = vsel %vm102_vm9, %v1896_v39, %v101_v57  ;;  %vm258_vm14 = vcmp.eq.f32.partialorder %v1944_v26, inf  ;;  %v171_v11 = vsub.f32 1.5, %v170_v10  ;;  %vm260_vm15 = vcmp.eq.f32.partialorder %v1944_v26, 0.0 }
  0x9d   :  { %v232_v54 = vmul.f32 %v1419_v20, %v231_v63  ;;  %v1425_v15 = vpop.eup %1424  ;;  %v158_v36 = vmul.f32 0.5, %v157_v1  ;;  %v165_v20 = vand.u32 2147483648, %v1922_v16  ;;  %v2012_v44 = vpop.xlane.xlu2 %223  ;;  %v2039_v38 = vsel %vm128_vm10, %v129_v23, %v127_v13 }
  0x9e   :  { %v2001_v29 = vpop.xlane.xlu1 %221  ;;  %v252_v31 = vmul.f32 %v1425_v15, %v1944_v26  ;;  %v1427_v17 = vpop.eup %1426  ;;  %v261_v45 = vand.u32 2147483648, %v1944_v26  ;;  %v2047_v48 = vsel %vm104_vm11, %v105_v47, %v103_v62  ;;  %vm162_vm1 = vcmp.eq.f32.partialorder %v1922_v16, inf }
  0x9f   :  { %v233_v9 = vmul.f32 %v232_v54, %v1910_v51  ;;  %1430 = vrsqrt.f32 %v2001_v29  ;;  %v2024_v40 = vpop.xlane.xlu0 %219  ;;  %v159_v27 = vsub.f32 1.5, %v158_v36  ;;  %v264_v4 = vmul.f32 %v1427_v17, %v1946_v41 }
  0xa0   :  { %v253_v14 = vmul.f32 %v1425_v15, %v252_v31  ;;  %1432 = vrsqrt.f32 %v2012_v44  ;;  %vm272_vm2 = vcmp.eq.f32.partialorder %v1946_v41, 0.0  ;;  %v273_v33 = vand.u32 2147483648, %v1946_v41 }
  0xa1   :  { %v235_v59 = vsel %vm234_vm12, %v1910_v51, %v233_v9  ;;  %v1429_v51 = vpop.eup %1428  ;;  %v265_v35 = vmul.f32 %v1427_v17, %v264_v4  ;;  %1434 = vrsqrt.f32 %v2024_v40  ;;  %v160_v23 = vmul.f32 %v1423_v2, %v159_v27 }
  0xa2   :  { %v238_v3 = vsel %vm236_vm13, %v237_v24, %v235_v59  ;;  %1091 = vadd.xlane.f32.xlu2 %v1079_v46  ;;  %v254_v43 = vmul.f32 0.5, %v253_v14  ;;  %v240_v5 = vmul.f32 %v1429_v51, %v1953_v22  ;;  %v2057_v39 = vmul.f32 %v1938_v12, %v171_v11 }
  0xa3   :  { %v2031_v42 = vadd.f32 %v238_v3, %v94_v34  ;;  %951 = vadd.xlane.f32.xlu1 %v937_v60  ;;  %v266_v7 = vmul.f32 0.5, %v265_v35  ;;  %vm164_vm3 = vcmp.eq.f32.partialorder %v1922_v16, 0.0  ;;  %vm246_vm4 = vcmp.eq.f32.partialorder %v1953_v22, inf }
  0xa4   :  { %v255_v53 = vsub.f32 1.5, %v254_v43  ;;  %v241_v60 = vmul.f32 %v1429_v51, %v240_v5  ;;  %v1078_v2 = vmul.f32 %v1971_v8, %v1971_v8  ;;  %vm248_vm5 = vcmp.eq.f32.partialorder %v1953_v22, 0.0 }
  0xa5   :  { %v1431_v28 = vpop.eup %1430  ;;  %v267_v63 = vsub.f32 1.5, %v266_v7  ;;  %v249_v12 = vand.u32 2147483648, %v1953_v22  ;;  %v161_v54 = vmul.f32 %v160_v23, %v1922_v16  ;;  %vm294_vm6 = vcmp.eq.f32.partialorder %v2001_v29, inf  ;;  %v2072_v55 = vpop.xlane.xlu2 %357 }
  0xa6   :  { %v2054_v58 = vpop.xlane.xlu1 %355  ;;  %v256_v47 = vmul.f32 %v1425_v15, %v255_v53  ;;  %v288_v61 = vmul.f32 %v1431_v28, %v2001_v29  ;;  %v1433_v46 = vpop.eup %1432  ;;  %v242_v19 = vmul.f32 0.5, %v241_v60  ;;  %v297_v15 = vand.u32 2147483648, %v2001_v29  ;;  %1089 = vadd.xlane.f32.xlu0 %v1078_v2 }
  0xa7   :  { %1436 = vrsqrt.f32 %v2054_v58  ;;  %v268_v24 = vmul.f32 %v1427_v17, %v267_v63  ;;  %v300_v8 = vmul.f32 %v1433_v46, %v2012_v44  ;;  %v1435_v57 = vpop.eup %1434  ;;  %vm296_vm7 = vcmp.eq.f32.partialorder %v2001_v29, 0.0  ;;  %v2080_v34 = vpop.xlane.xlu0 %225 }
  0xa8   :  { %v257_v49 = vmul.f32 %v256_v47, %v1944_v26  ;;  %v289_v21 = vmul.f32 %v1431_v28, %v288_v61  ;;  %v243_v10 = vsub.f32 1.5, %v242_v19  ;;  %vm306_vm8 = vcmp.eq.f32.partialorder %v2012_v44, inf }
  0xa9   :  { %v309_v31 = vand.u32 2147483648, %v2012_v44  ;;  %v269_v17 = vmul.f32 %v268_v24, %v1946_v41  ;;  %v301_v13 = vmul.f32 %v1433_v46, %v300_v8  ;;  %vm308_vm9 = vcmp.eq.f32.partialorder %v2012_v44, 0.0 }
  0xaa   :  { %v259_v1 = vsel %vm258_vm14, %v1944_v26, %v257_v49  ;;  %v290_v9 = vmul.f32 0.5, %v289_v21  ;;  %v276_v59 = vmul.f32 %v1435_v57, %v2024_v40  ;;  %v244_v62 = vmul.f32 %v1429_v51, %v243_v10 }
  0xab   :  { %v262_v36 = vsel %vm260_vm15, %v261_v45, %v259_v1  ;;  %1438 = vrsqrt.f32 %v2072_v55  ;;  %v163_v26 = vsel %vm162_vm1, %v1922_v16, %v161_v54  ;;  %v271_v4 = vsel %vm270_vm0, %v1946_v41, %v269_v17 }
  0xac   :  { %v2088_v14 = vadd.f32 %v262_v36, %v1986_v30  ;;  %v291_v3 = vsub.f32 1.5, %v290_v9  ;;  %v302_v11 = vmul.f32 0.5, %v301_v13  ;;  %v277_v43 = vmul.f32 %v1435_v57, %v276_v59 }
  0xad   :  { %v1437_v27 = vpop.eup %1436  ;;  %v274_v45 = vsel %vm272_vm2, %v273_v33, %v271_v4  ;;  %v245_v30 = vmul.f32 %v244_v62, %v1953_v22  ;;  %vm282_vm10 = vcmp.eq.f32.partialorder %v2024_v40, inf  ;;  %vm284_vm11 = vcmp.eq.f32.partialorder %v2024_v40, 0.0  ;;  %v2131_v21 = vpop.xlane.xlu2 %363 }
  0xae   :  { %v292_v51 = vmul.f32 %v1431_v28, %v291_v3  ;;  %v372_v35 = vmul.f32 %v1437_v27, %v2054_v58  ;;  %v2103_v53 = vadd.f32 %v274_v45, %v2039_v38  ;;  %v303_v5 = vsub.f32 1.5, %v302_v11  ;;  %v2115_v38 = vpop.xlane.xlu1 %361 }
  0xaf   :  { %v278_v23 = vmul.f32 0.5, %v277_v43  ;;  %v285_v7 = vand.u32 2147483648, %v2024_v40  ;;  %v166_v41 = vsel %vm164_vm3, %v165_v20, %v163_v26  ;;  %v247_v28 = vsel %vm246_vm4, %v1953_v22, %v245_v30  ;;  %v2138_v8 = vpop.xlane.xlu0 %359 }
  0xb0   :  { %v293_v33 = vmul.f32 %v292_v51, %v2001_v29  ;;  %v373_v47 = vmul.f32 %v1437_v27, %v372_v35  ;;  %v250_v60 = vsel %vm248_vm5, %v249_v12, %v247_v28  ;;  %v304_v61 = vmul.f32 %v1433_v46, %v303_v5 }
  0xb1   :  { %v279_v63 = vsub.f32 1.5, %v278_v23  ;;  %1440 = vrsqrt.f32 %v2080_v34  ;;  %v1439_v2 = vpop.eup %1438  ;;  %v2121_v16 = vadd.f32 %v250_v60, %v2047_v48  ;;  %vm378_vm12 = vcmp.eq.f32.partialorder %v2054_v58, inf }
  0xb2   :  { %v295_v20 = vsel %vm294_vm6, %v2001_v29, %v293_v33  ;;  %v374_v49 = vmul.f32 0.5, %v373_v47  ;;  %v305_v22 = vmul.f32 %v304_v61, %v2012_v44  ;;  %v384_v12 = vmul.f32 %v1439_v2, %v2072_v55 }
  0xb3   :  { %v298_v19 = vsel %vm296_vm7, %v297_v15, %v295_v20  ;;  %v280_v46 = vmul.f32 %v1435_v57, %v279_v63  ;;  %vm380_vm13 = vcmp.eq.f32.partialorder %v2054_v58, 0.0  ;;  %v381_v24 = vand.u32 2147483648, %v2054_v58 }
  0xb4   :  { %v2134_v48 = vadd.f32 %v298_v19, %v2016_v18  ;;  %v375_v54 = vsub.f32 1.5, %v374_v49  ;;  %v307_v29 = vsel %vm306_vm8, %v2012_v44, %v305_v22  ;;  %v385_v57 = vmul.f32 %v1439_v2, %v384_v12 }
  0xb5   :  { %v281_v15 = vmul.f32 %v280_v46, %v2024_v40  ;;  %v1064_v1 = vperm.slane %v1837_v0, 7  ;;  %v310_v18 = vsel %vm308_vm9, %v309_v31, %v307_v29  ;;  %v1065_v9 = vperm.slane %v1846_v6, 7 }
  0xb6   :  { %v376_v10 = vmul.f32 %v1437_v27, %v375_v54  ;;  %v922_v36 = vperm.slane %v1856_v37, 6  ;;  %v2149_v13 = vadd.f32 %v310_v18, %v166_v41  ;;  %v386_v62 = vmul.f32 0.5, %v385_v57  ;;  %v2168_v45 = vpop.xlane.xlu1 %367 }
  0xb7   :  { %v1441_v17 = vpop.eup %1440  ;;  %v283_v59 = vsel %vm282_vm10, %v2024_v40, %v281_v15  ;;  %v1072_v3 = vsub.f32 %v1689_v25, %v1064_v1  ;;  %v1073_v6 = vsub.f32 %v1751_v52, %v1065_v9  ;;  %1442 = vrsqrt.f32 %v2115_v38 }
  0xb8   :  { %v286_v0 = vsel %vm284_vm11, %v285_v7, %v283_v59  ;;  %v377_v44 = vmul.f32 %v376_v10, %v2054_v58  ;;  %v312_v31 = vmul.f32 %v1441_v17, %v2080_v34  ;;  %v387_v26 = vsub.f32 1.5, %v386_v62 }
  0xb9   :  { %v2161_v27 = vadd.f32 %v286_v0, %v1980_v56  ;;  %v1080_v4 = vmul.f32 %v1072_v3, %v1072_v3  ;;  %v930_v11 = vsub.f32 %v1745_v50, %v922_v36  ;;  %v1081_v40 = vmul.f32 %v1073_v6, %v1073_v6 }
  0xba   :  { %v379_v25 = vsel %vm378_vm12, %v2054_v58, %v377_v44  ;;  %v313_v43 = vmul.f32 %v1441_v17, %v312_v31  ;;  %v173_v52 = vmul.f32 %v2057_v39, %v1916_v32  ;;  %v388_v30 = vmul.f32 %v1439_v2, %v387_v26  ;;  %v2182_v58 = vpop.xlane.xlu2 %369 }
  0xbb   :  { %v382_v56 = vsel %vm380_vm13, %v381_v24, %v379_v25  ;;  %1093 = vadd.xlane.f32.xlu1 %v1080_v4  ;;  %v938_v51 = vmul.f32 %v930_v11, %v930_v11  ;;  %vm390_vm14 = vcmp.eq.f32.partialorder %v2072_v55, inf  ;;  %v393_v5 = vand.u32 2147483648, %v2072_v55  ;;  %1095 = vadd.xlane.f32.xlu2 %v1081_v40 }
  0xbc   :  { %v2175_v35 = vadd.f32 %v382_v56, %v2031_v42  ;;  %v314_v23 = vmul.f32 0.5, %v313_v43  ;;  %v389_v7 = vmul.f32 %v388_v30, %v2072_v55  ;;  %vm392_vm15 = vcmp.eq.f32.partialorder %v2072_v55, 0.0  ;;  %v2186_v42 = vpop.xlane.xlu0 %365 }
  0xbd   :  { %953 = vadd.xlane.f32.xlu0 %v938_v51  ;;  %1444 = vrsqrt.f32 %v2131_v21  ;;  %vm174_vm0 = vcmp.eq.f32.partialorder %v1916_v32, inf  ;;  %v1066_v33 = vperm.slane %v1856_v37, 7  ;;  %v1443_v47 = vpop.eup %1442  ;;  %v177_v60 = vand.u32 2147483648, %v1916_v32 }
  0xbe   :  { %v315_v39 = vsub.f32 1.5, %v314_v23  ;;  %1446 = vrsqrt.f32 %v2138_v8  ;;  %v175_v41 = vsel %vm174_vm0, %v1916_v32, %v173_v52  ;;  %v391_v28 = vsel %vm390_vm14, %v2072_v55, %v389_v7  ;;  %v2209_v24 = vpop.xlane.xlu1 %501 }
  0xbf   :  { %v394_v61 = vsel %vm392_vm15, %v393_v5, %v391_v28  ;;  %1448 = vrsqrt.f32 %v2168_v45  ;;  %vm176_vm1 = vcmp.eq.f32.partialorder %v1916_v32, 0.0  ;;  %v408_v20 = vmul.f32 %v1443_v47, %v2115_v38 }
  0xc0   :  { %v316_v63 = vmul.f32 %v1441_v17, %v315_v39  ;;  %v2195_v2 = vadd.f32 %v394_v61, %v2121_v16  ;;  %v1074_v49 = vsub.f32 %v1745_v50, %v1066_v33  ;;  %v178_v19 = vsel %vm176_vm1, %v177_v60, %v175_v41 }
  0xc1   :  { %vm318_vm2 = vcmp.eq.f32.partialorder %v2080_v34, inf  ;;  %1450 = vrsqrt.f32 %v2182_v58  ;;  %vm320_vm3 = vcmp.eq.f32.partialorder %v2080_v34, 0.0  ;;  %v321_v22 = vand.u32 2147483648, %v2080_v34 }
  0xc2   :  { %v317_v55 = vmul.f32 %v316_v63, %v2080_v34  ;;  %v409_v32 = vmul.f32 %v1443_v47, %v408_v20  ;;  %v1082_v46 = vmul.f32 %v1074_v49, %v1074_v49  ;;  %vm414_vm4 = vcmp.eq.f32.partialorder %v2115_v38, inf  ;;  %v2220_v62 = vpop.xlane.xlu2 %503 }
  0xc3   :  { %v1445_v37 = vpop.eup %1444  ;;  %v417_v50 = vand.u32 2147483648, %v2115_v38  ;;  %1452 = vrsqrt.f32 %v2186_v42  ;;  %vm416_vm5 = vcmp.eq.f32.partialorder %v2115_v38, 0.0  ;;  %vm426_vm6 = vcmp.eq.f32.partialorder %v2131_v21, inf }
  0xc4   :  { %v1447_v16 = vpop.eup %1446  ;;  %v319_v12 = vsel %vm318_vm2, %v2080_v34, %v317_v55  ;;  %v420_v54 = vmul.f32 %v1445_v37, %v2131_v21  ;;  %v410_v15 = vmul.f32 0.5, %v409_v32  ;;  %vm428_vm7 = vcmp.eq.f32.partialorder %v2131_v21, 0.0  ;;  %v2224_v6 = vpop.xlane.xlu0 %499 }
  0xc5   :  { %v322_v29 = vsel %vm320_vm3, %v321_v22, %v319_v12  ;;  %v396_v57 = vmul.f32 %v1447_v16, %v2138_v8  ;;  %1097 = vadd.xlane.f32.xlu0 %v1082_v46  ;;  %v1449_v34 = vpop.eup %1448  ;;  %v429_v10 = vand.u32 2147483648, %v2131_v21  ;;  %v1226_v9 = vlaneseq }
  0xc6   :  { %v2214_v1 = vadd.f32 %v322_v29, %v178_v19  ;;  %v421_v18 = vmul.f32 %v1445_v37, %v420_v54  ;;  %v411_v36 = vsub.f32 1.5, %v410_v15  ;;  %v444_v59 = vmul.f32 %v1449_v34, %v2168_v45 }
  0xc7   :  { %v397_v17 = vmul.f32 %v1447_v16, %v396_v57  ;;  %1454 = vrsqrt.f32 %v2209_v24  ;;  %v1451_v3 = vpop.eup %1450  ;;  %vm402_vm8 = vcmp.eq.f32.partialorder %v2138_v8, inf  ;;  %v405_v44 = vand.u32 2147483648, %v2138_v8 }
  0xc8   :  { %v422_v0 = vmul.f32 0.5, %v421_v18  ;;  %v1232_v31 = vshrl.u32 %v1226_v9, 7  ;;  %v412_v26 = vmul.f32 %v1443_v47, %v411_v36  ;;  %vm404_vm9 = vcmp.eq.f32.partialorder %v2138_v8, 0.0 }
  0xc9   :  { %v398_v4 = vmul.f32 0.5, %v397_v17  ;;  %v445_v11 = vmul.f32 %v1449_v34, %v444_v59  ;;  %v456_v25 = vmul.f32 %v1451_v3, %v2182_v58  ;;  %v1453_v43 = vpop.eup %1452  ;;  %vm450_vm10 = vcmp.eq.f32.partialorder %v2168_v45, inf }
  0xca   :  { %v423_v40 = vsub.f32 1.5, %v422_v0  ;;  %v453_v52 = vand.u32 2147483648, %v2168_v45  ;;  %vm462_vm11 = vcmp.eq.f32.partialorder %v2182_v58, inf  ;;  %1402 = vset.pattern.permute.xlu1 %v1232_v31  ;;  %1456 = vrsqrt.f32 %v2220_v62 }
  0xcb   :  { %v413_v56 = vmul.f32 %v412_v26, %v2115_v38  ;;  %v399_v30 = vsub.f32 1.5, %v398_v4  ;;  %v446_v51 = vmul.f32 0.5, %v445_v11  ;;  %vm452_vm12 = vcmp.eq.f32.partialorder %v2168_v45, 0.0 }
  0xcc   :  { %v457_v5 = vmul.f32 %v1451_v3, %v456_v25  ;;  %v424_v23 = vmul.f32 %v1445_v37, %v423_v40  ;;  %vm464_vm13 = vcmp.eq.f32.partialorder %v2182_v58, 0.0  ;;  %v465_v7 = vand.u32 2147483648, %v2182_v58  ;;  %v2267_v36 = vpop.xlane.xlu0 %505 }
  0xcd   :  { %v432_v39 = vmul.f32 %v1453_v43, %v2186_v42  ;;  %v1455_v41 = vpop.eup %1454  ;;  %v415_v28 = vsel %vm414_vm4, %v2115_v38, %v413_v56  ;;  %v400_v33 = vmul.f32 %v1447_v16, %v399_v30  ;;  %v447_v47 = vsub.f32 1.5, %v446_v51 }
  0xce   :  { %v458_v60 = vmul.f32 0.5, %v457_v5  ;;  %v418_v61 = vsel %vm416_vm5, %v417_v50, %v415_v28  ;;  %v425_v63 = vmul.f32 %v424_v23, %v2131_v21  ;;  %v528_v49 = vmul.f32 %v1455_v41, %v2209_v24  ;;  %v2254_v50 = vpop.xlane.xlu1 %651 }
  0xcf   :  { %v433_v20 = vmul.f32 %v1453_v43, %v432_v39  ;;  %v2245_v19 = vadd.f32 %v418_v61, %v2103_v53  ;;  %v401_v55 = vmul.f32 %v400_v33, %v2138_v8  ;;  %v448_v37 = vmul.f32 %v1449_v34, %v447_v47 }
  0xd0   :  { %v459_v22 = vsub.f32 1.5, %v458_v60  ;;  %vm438_vm14 = vcmp.eq.f32.partialorder %v2186_v42, inf  ;;  %v1457_v32 = vpop.eup %1456  ;;  %v427_v38 = vsel %vm426_vm6, %v2131_v21, %v425_v63  ;;  %v2252_v16 = vand.u32 127, %v1226_v9 }
  0xd1   :  { %v434_v46 = vmul.f32 0.5, %v433_v20  ;;  %v529_v12 = vmul.f32 %v1455_v41, %v528_v49  ;;  %v430_v53 = vsel %vm428_vm7, %v429_v10, %v427_v38  ;;  %v403_v54 = vsel %vm402_vm8, %v2138_v8, %v401_v55 }
  0xd2   :  { %v449_v29 = vmul.f32 %v448_v37, %v2168_v45  ;;  %v460_v15 = vmul.f32 %v1451_v3, %v459_v22  ;;  %v2263_v57 = vadd.f32 %v430_v53, %v2161_v27  ;;  %v406_v34 = vsel %vm404_vm9, %v405_v44, %v403_v54  ;;  %v2275_v3 = vpop.xlane.xlu2 %653 }
  0xd3   :  { %v435_v18 = vsub.f32 1.5, %v434_v46  ;;  %v530_v9 = vmul.f32 0.5, %v529_v12  ;;  %v469_v21 = vadd.f32 %v406_v34, %v2088_v14  ;;  %v540_v59 = vmul.f32 %v1457_v32, %v2220_v62 }
  0xd4   :  { %v451_v10 = vsel %vm450_vm10, %v2168_v45, %v449_v29  ;;  %v461_v17 = vmul.f32 %v460_v15, %v2182_v58  ;;  %1458 = vrsqrt.f32 %v2224_v6  ;;  %vm440_vm15 = vcmp.eq.f32.partialorder %v2186_v42, 0.0  ;;  %v2316_v33 = vpop.xlane.xlu0 %507 }
  0xd5   :  { %v454_v8 = vsel %vm452_vm12, %v453_v52, %v451_v10  ;;  %v436_v27 = vmul.f32 %v1453_v43, %v435_v18  ;;  %v531_v0 = vsub.f32 1.5, %v530_v9  ;;  %v541_v31 = vmul.f32 %v1457_v32, %v540_v59 }
  0xd6   :  { %v2281_v44 = vadd.f32 %v454_v8, %v2149_v13  ;;  %v463_v14 = vsel %vm462_vm11, %v2182_v58, %v461_v17  ;;  %v441_v4 = vand.u32 2147483648, %v2186_v42  ;;  %vm534_vm0 = vcmp.eq.f32.partialorder %v2209_v24, inf }
  0xd7   :  { %v466_v26 = vsel %vm464_vm13, %v465_v7, %v463_v14  ;;  %v437_v45 = vmul.f32 %v436_v27, %v2186_v42  ;;  %v532_v11 = vmul.f32 %v1455_v41, %v531_v0  ;;  %v542_v13 = vmul.f32 0.5, %v541_v31 }
  0xd8   :  { %v2292_v25 = vadd.f32 %v466_v26, %v2214_v1  ;;  %vm1228_vm1 = vcmp.eq.s32.totalorder %v2252_v16, 0  ;;  %1460 = vrsqrt.f32 %v2254_v50  ;;  %v537_v52 = vand.u32 2147483648, %v2209_v24 }
  0xd9   :  { %v439_v43 = vsel %vm438_vm14, %v2186_v42, %v437_v45  ;;  %v533_v58 = vmul.f32 %v532_v11, %v2209_v24  ;;  %v543_v56 = vsub.f32 1.5, %v542_v13  ;;  %v1568_v30 = vmov -1.0   ;;  %v2307_v42 = vpop.xlane.xlu1 %655 }
  0xda   :  { %v442_v40 = vsel %vm440_vm15, %v441_v4, %v439_v43  ;;  %v1229_v1 = vsel %vm1228_vm1, 1.0, %v1568_v30  ;;  %v1459_v51 = vpop.eup %1458  ;;  %vm536_vm2 = vcmp.eq.f32.partialorder %v2209_v24, 0.0  ;;  %1462 = vrsqrt.f32 %v2275_v3  ;;  %v2321_v60 = vpop.xlane.xlu2 %509 }
  0xdb   :  { %v2303_v5 = vadd.f32 %v442_v40, %v2134_v48  ;;  %v535_v23 = vsel %vm534_vm0, %v2209_v24, %v533_v58  ;;  %1235 = vperm.xlu1 %1402, %v1229_v1   ;;  %v544_v39 = vmul.f32 %v1457_v32, %v543_v56  ;;  %v516_v41 = vmul.f32 %v1459_v51, %v2224_v6 }
  0xdc   :  { %v538_v7 = vsel %vm536_vm2, %v537_v52, %v535_v23  ;;  %vm546_vm3 = vcmp.eq.f32.partialorder %v2220_v62, inf  ;;  %v549_v48 = vand.u32 2147483648, %v2220_v62  ;;  %vm548_vm4 = vcmp.eq.f32.partialorder %v2220_v62, 0.0  ;;  %v2345_v0 = vpop.xlane.xlu0 %657 }
  0xdd   :  { %v2312_v28 = vadd.f32 %v538_v7, %v2195_v2  ;;  %v545_v24 = vmul.f32 %v544_v39, %v2220_v62  ;;  %v517_v47 = vmul.f32 %v1459_v51, %v516_v41  ;;  %1464 = vrsqrt.f32 %v2267_v36 }
  0xde   :  { %v1461_v61 = vpop.eup %1460  ;;  %1466 = vrsqrt.f32 %v2307_v42  ;;  %vm522_vm5 = vcmp.eq.f32.partialorder %v2224_v6, inf  ;;  %vm524_vm6 = vcmp.eq.f32.partialorder %v2224_v6, 0.0  ;;  %v525_v12 = vand.u32 2147483648, %v2224_v6 }
  0xdf   :  { %v547_v2 = vsel %vm546_vm3, %v2220_v62, %v545_v24  ;;  %v518_v63 = vmul.f32 0.5, %v517_v47  ;;  %v668_v20 = vmul.f32 %v1461_v61, %v2254_v50  ;;  %1468 = vrsqrt.f32 %v2321_v60 }
  0xe0   :  { %v550_v49 = vsel %vm548_vm4, %v549_v48, %v547_v2  ;;  %v1463_v55 = vpop.eup %1462  ;;  %1470 = vrsqrt.f32 %v2316_v33  ;;  %vm674_vm7 = vcmp.eq.f32.partialorder %v2254_v50, inf  ;;  %vm676_vm8 = vcmp.eq.f32.partialorder %v2254_v50, 0.0 }
  0xe1   :  { %v2327_v37 = vadd.f32 %v550_v49, %v469_v21  ;;  %v519_v22 = vsub.f32 1.5, %v518_v63  ;;  %v669_v32 = vmul.f32 %v1461_v61, %v668_v20  ;;  %v680_v38 = vmul.f32 %v1463_v55, %v2275_v3  ;;  %v2338_v18 = vpop.xlane.xlu1 %795 }
  0xe2   :  { %v677_v29 = vand.u32 2147483648, %v2254_v50  ;;  %vm686_vm9 = vcmp.eq.f32.partialorder %v2275_v3, inf  ;;  %vm688_vm10 = vcmp.eq.f32.partialorder %v2275_v3, 0.0  ;;  %v689_v8 = vand.u32 2147483648, %v2275_v3  ;;  %v2369_v63 = vpop.xlane.xlu2 %797 }
  0xe3   :  { %v1465_v62 = vpop.eup %1464  ;;  %v520_v46 = vmul.f32 %v1459_v51, %v519_v22  ;;  %v670_v53 = vmul.f32 0.5, %v669_v32  ;;  %v681_v15 = vmul.f32 %v1463_v55, %v680_v38  ;;  %vm558_vm11 = vcmp.eq.f32.partialorder %v2267_v36, inf }
  0xe4   :  { %v1467_v54 = vpop.eup %1466  ;;  %v552_v34 = vmul.f32 %v1465_v62, %v2267_v36  ;;  %vm560_vm12 = vcmp.eq.f32.partialorder %v2267_v36, 0.0  ;;  %v561_v51 = vand.u32 2147483648, %v2267_v36  ;;  %vm698_vm13 = vcmp.eq.f32.partialorder %v2307_v42, inf }
  0xe5   :  { %v521_v9 = vmul.f32 %v520_v46, %v2224_v6  ;;  %v671_v21 = vsub.f32 1.5, %v670_v53  ;;  %v692_v10 = vmul.f32 %v1467_v54, %v2307_v42  ;;  %v1469_v17 = vpop.eup %1468  ;;  %v682_v59 = vmul.f32 0.5, %v681_v15 }
  0xe6   :  { %v553_v27 = vmul.f32 %v1465_v62, %v552_v34  ;;  %v576_v45 = vmul.f32 %v1469_v17, %v2321_v60  ;;  %v1471_v4 = vpop.eup %1470  ;;  %vm700_vm14 = vcmp.eq.f32.partialorder %v2307_v42, 0.0  ;;  %vm582_vm15 = vcmp.eq.f32.partialorder %v2321_v60, inf }
  0xe7   :  { %v523_v14 = vsel %vm522_vm5, %v2224_v6, %v521_v9  ;;  %v672_v31 = vmul.f32 %v1461_v61, %v671_v21  ;;  %v693_v26 = vmul.f32 %v1467_v54, %v692_v10  ;;  %v683_v13 = vsub.f32 1.5, %v682_v59 }
  0xe8   :  { %v526_v11 = vsel %vm524_vm6, %v525_v12, %v523_v14  ;;  %v554_v43 = vmul.f32 0.5, %v553_v27  ;;  %v577_v56 = vmul.f32 %v1469_v17, %v576_v45  ;;  %v564_v23 = vmul.f32 %v1471_v4, %v2316_v33 }
  0xe9   :  { %v611_v58 = vadd.f32 %v526_v11, %v2175_v35  ;;  %v673_v40 = vmul.f32 %v672_v31, %v2254_v50  ;;  %v694_v52 = vmul.f32 0.5, %v693_v26  ;;  %v684_v30 = vmul.f32 %v1463_v55, %v683_v13  ;;  %v2376_v22 = vpop.xlane.xlu1 %659 }
  0xea   :  { %v555_v1 = vsub.f32 1.5, %v554_v43  ;;  %v578_v39 = vmul.f32 0.5, %v577_v56  ;;  %v565_v24 = vmul.f32 %v1471_v4, %v564_v23  ;;  %v585_v53 = vand.u32 2147483648, %v2321_v60 }
  0xeb   :  { %v675_v6 = vsel %vm674_vm7, %v2254_v50, %v673_v40  ;;  %v695_v7 = vsub.f32 1.5, %v694_v52  ;;  %v685_v41 = vmul.f32 %v684_v30, %v2275_v3  ;;  %v701_v50 = vand.u32 2147483648, %v2307_v42 }
  0xec   :  { %v678_v35 = vsel %vm676_vm8, %v677_v29, %v675_v6  ;;  %v556_v48 = vmul.f32 %v1465_v62, %v555_v1  ;;  %v579_v2 = vsub.f32 1.5, %v578_v39  ;;  %v566_v55 = vmul.f32 0.5, %v565_v24  ;;  %v2389_v29 = vpop.xlane.xlu0 %511 }
  0xed   :  { %v2366_v47 = vadd.f32 %v678_v35, %v611_v58  ;;  %v696_v61 = vmul.f32 %v1467_v54, %v695_v7  ;;  %v687_v20 = vsel %vm686_vm9, %v2275_v3, %v685_v41  ;;  %vm584_vm0 = vcmp.eq.f32.partialorder %v2321_v60, 0.0 }
  0xee   :  { %v557_v49 = vmul.f32 %v556_v48, %v2267_v36  ;;  %v690_v32 = vsel %vm688_vm10, %v689_v8, %v687_v20  ;;  %v580_v62 = vmul.f32 %v1469_v17, %v579_v2  ;;  %v567_v54 = vsub.f32 1.5, %v566_v55 }
  0xef   :  { %v697_v38 = vmul.f32 %v696_v61, %v2307_v42  ;;  %v2383_v46 = vadd.f32 %v690_v32, %v2312_v28  ;;  %1472 = vrsqrt.f32 %v2345_v0  ;;  %vm570_vm1 = vcmp.eq.f32.partialorder %v2316_v33, inf }
  0xf0   :  { %v559_v12 = vsel %vm558_vm11, %v2267_v36, %v557_v49  ;;  %v581_v34 = vmul.f32 %v580_v62, %v2321_v60  ;;  %v568_v21 = vmul.f32 %v1471_v4, %v567_v54  ;;  %vm572_vm2 = vcmp.eq.f32.partialorder %v2316_v33, 0.0 }
  0xf1   :  { %v562_v3 = vsel %vm560_vm12, %v561_v51, %v559_v12  ;;  %v699_v15 = vsel %vm698_vm13, %v2307_v42, %v697_v38  ;;  %1474 = vrsqrt.f32 %v2376_v22  ;;  %v2418_v14 = vpop.xlane.xlu1 %661  ;;  %vm710_vm3 = vcmp.eq.f32.partialorder %v2345_v0, inf }
  0xf2   :  { %v614_v28 = vadd.f32 %v562_v3, %v2245_v19  ;;  %v702_v9 = vsel %vm700_vm14, %v701_v50, %v699_v15  ;;  %v583_v36 = vsel %vm582_vm15, %v2321_v60, %v581_v34  ;;  %v569_v59 = vmul.f32 %v568_v21, %v2316_v33  ;;  %v2415_v60 = vpop.xlane.xlu2 %799 }
  0xf3   :  { %v2402_v10 = vadd.f32 %v702_v9, %v2327_v37  ;;  %v586_v17 = vsel %vm584_vm0, %v585_v53, %v583_v36  ;;  %v573_v19 = vand.u32 2147483648, %v2316_v33  ;;  %1476 = vrsqrt.f32 %v2389_v29 }
  0xf4   :  { %v2408_v8 = vadd.f32 %v586_v17, %v2303_v5  ;;  %v571_v42 = vsel %vm570_vm1, %v2316_v33, %v569_v59  ;;  %v2421_v5 = vpop.xlane.xlu0 %513  ;;  %1478 = vrsqrt.f32 %v2418_v14  ;;  %vm712_vm4 = vcmp.eq.f32.partialorder %v2345_v0, 0.0 }
  0xf5   :  { %v574_v37 = vsel %vm572_vm2, %v573_v19, %v571_v42  ;;  %v1473_v31 = vpop.eup %1472  ;;  %1480 = vrsqrt.f32 %v2421_v5  ;;  %v713_v61 = vand.u32 2147483648, %v2345_v0  ;;  %vm722_vm5 = vcmp.eq.f32.partialorder %v2376_v22, inf }
  0xf6   :  { %v615_v27 = vadd.f32 %v574_v37, %v2263_v57  ;;  %v704_v26 = vmul.f32 %v1473_v31, %v2345_v0  ;;  %1482 = vrsqrt.f32 %v2338_v18  ;;  %v725_v62 = vand.u32 2147483648, %v2376_v22 }
  0xf7   :  { %v1475_v45 = vpop.eup %1474  ;;  %1484 = vrsqrt.f32 %v2369_v63  ;;  %vm724_vm6 = vcmp.eq.f32.partialorder %v2376_v22, 0.0  ;;  %vm594_vm7 = vcmp.eq.f32.partialorder %v2389_v29, inf  ;;  %vm596_vm8 = vcmp.eq.f32.partialorder %v2389_v29, 0.0 }
  0xf8   :  { %v705_v33 = vmul.f32 %v1473_v31, %v704_v26  ;;  %v716_v4 = vmul.f32 %v1475_v45, %v2376_v22  ;;  %vm734_vm9 = vcmp.eq.f32.partialorder %v2418_v14, inf  ;;  %vm736_vm10 = vcmp.eq.f32.partialorder %v2418_v14, 0.0 }
  0xf9   :  { %v1477_v57 = vpop.eup %1476  ;;  %v2437_v24 = vpop.xlane.xlu1 %941  ;;  %1486 = vrsqrt.f32 %v2415_v60  ;;  %vm606_vm11 = vcmp.eq.f32.partialorder %v2421_v5, inf  ;;  %vm608_vm12 = vcmp.eq.f32.partialorder %v2421_v5, 0.0  ;;  %vm818_vm13 = vcmp.eq.f32.partialorder %v2338_v18, inf }
  0xfa   :  { %v706_v11 = vmul.f32 0.5, %v705_v33  ;;  %v717_v13 = vmul.f32 %v1475_v45, %v716_v4  ;;  %v1479_v43 = vpop.eup %1478  ;;  %v588_v52 = vmul.f32 %v1477_v57, %v2389_v29  ;;  %v2428_v56 = vpop.xlane.xlu2 %801  ;;  %vm830_vm14 = vcmp.eq.f32.partialorder %v2369_v63, inf }
  0xfb   :  { %v728_v30 = vmul.f32 %v1479_v43, %v2418_v14  ;;  %v1481_v6 = vpop.eup %1480  ;;  %1488 = vrsqrt.f32 %v2428_v56  ;;  %vm820_vm15 = vcmp.eq.f32.partialorder %v2338_v18, 0.0  ;;  %vm832_vm0 = vcmp.eq.f32.partialorder %v2369_v63, 0.0 }
  0xfc   :  { %v707_v58 = vsub.f32 1.5, %v706_v11  ;;  %v718_v40 = vmul.f32 0.5, %v717_v13  ;;  %v589_v23 = vmul.f32 %v1477_v57, %v588_v52  ;;  %v2433_v39 = vpop.xlane.xlu0 %939  ;;  %v600_v20 = vmul.f32 %v1481_v6, %v2421_v5  ;;  %v1483_v32 = vpop.eup %1482 }
  0xfd   :  { %v729_v7 = vmul.f32 %v1479_v43, %v728_v30  ;;  %v1485_v34 = vpop.eup %1484  ;;  %v812_v36 = vmul.f32 %v1483_v32, %v2338_v18  ;;  %1490 = vrsqrt.f32 %v2437_v24  ;;  %vm842_vm1 = vcmp.eq.f32.partialorder %v2415_v60, inf }
  0xfe   :  { %v708_v1 = vmul.f32 %v1473_v31, %v707_v58  ;;  %v719_v51 = vsub.f32 1.5, %v718_v40  ;;  %v590_v48 = vmul.f32 0.5, %v589_v23  ;;  %v601_v53 = vmul.f32 %v1481_v6, %v600_v20 }
  0xff   :  { %v730_v2 = vmul.f32 0.5, %v729_v7  ;;  %v609_v58 = vand.u32 2147483648, %v2421_v5  ;;  %vm844_vm2 = vcmp.eq.f32.partialorder %v2415_v60, 0.0 }
 0x100   :  { %v709_v35 = vmul.f32 %v708_v1, %v2345_v0  ;;  %v720_v41 = vmul.f32 %v1475_v45, %v719_v51  ;;  %v591_v55 = vsub.f32 1.5, %v590_v48  ;;  %v602_v21 = vmul.f32 0.5, %v601_v53 }
 0x101   :  { %v731_v12 = vsub.f32 1.5, %v730_v2  ;;  %v2471_v13 = vpop.xlane.xlu1 %943 }
 0x102   :  { %v711_v49 = vsel %vm710_vm3, %v2345_v0, %v709_v35  ;;  %v721_v50 = vmul.f32 %v720_v41, %v2376_v22  ;;  %v592_v15 = vmul.f32 %v1477_v57, %v591_v55  ;;  %v2454_v19 = vpop.xlane.xlu2 %663  ;;  %vm854_vm3 = vcmp.eq.f32.partialorder %v2428_v56, inf }
 0x103   :  { %v714_v38 = vsel %vm712_vm4, %v713_v61, %v711_v49  ;;  %v732_v9 = vmul.f32 %v1479_v43, %v731_v12  ;;  %1492 = vrsqrt.f32 %v2454_v19  ;;  %vm856_vm4 = vcmp.eq.f32.partialorder %v2428_v56, 0.0 }
 0x104   :  { %v2446_v54 = vadd.f32 %v714_v38, %v614_v28  ;;  %v723_v3 = vsel %vm722_vm5, %v2376_v22, %v721_v50  ;;  %v593_v59 = vmul.f32 %v592_v15, %v2389_v29  ;;  %v597_v28 = vand.u32 2147483648, %v2389_v29  ;;  %v2465_v33 = vpop.xlane.xlu0 %803 }
 0x105   :  { %v726_v0 = vsel %vm724_vm6, %v725_v62, %v723_v3  ;;  %v733_v42 = vmul.f32 %v732_v9, %v2418_v14  ;;  %v603_v22 = vsub.f32 1.5, %v602_v21  ;;  %vm974_vm5 = vcmp.eq.f32.partialorder %v2437_v24, inf }
 0x106   :  { %v2451_v17 = vadd.f32 %v726_v0, %v615_v27  ;;  %v595_v37 = vsel %vm594_vm7, %v2389_v29, %v593_v59  ;;  %v737_v27 = vand.u32 2147483648, %v2418_v14  ;;  %v813_v29 = vmul.f32 %v1483_v32, %v812_v36 }
 0x107   :  { %v598_v31 = vsel %vm596_vm8, %v597_v28, %v595_v37  ;;  %v735_v26 = vsel %vm734_vm9, %v2418_v14, %v733_v42  ;;  %v604_v45 = vmul.f32 %v1481_v6, %v603_v22  ;;  %v824_v14 = vmul.f32 %v1485_v34, %v2369_v63 }
 0x108   :  { %v2469_v4 = vadd.f32 %v598_v31, %v2281_v44  ;;  %v738_v11 = vsel %vm736_vm10, %v737_v27, %v735_v26  ;;  %v814_v52 = vmul.f32 0.5, %v813_v29  ;;  %v833_v29 = vand.u32 2147483648, %v2369_v63 }
 0x109   :  { %v2474_v57 = vadd.f32 %v738_v11, %v2408_v8  ;;  %v605_v43 = vmul.f32 %v604_v45, %v2421_v5  ;;  %v1487_v8 = vpop.eup %1486  ;;  %v825_v1 = vmul.f32 %v1485_v34, %v824_v14  ;;  %v2494_v48 = vpop.xlane.xlu1 %945  ;;  %vm746_vm6 = vcmp.eq.f32.partialorder %v2454_v19, inf }
 0x10a   :  { %v2488_v51 = vpop.xlane.xlu2 %665  ;;  %v1489_v23 = vpop.eup %1488  ;;  %v815_v6 = vsub.f32 1.5, %v814_v52  ;;  %vm748_vm7 = vcmp.eq.f32.partialorder %v2454_v19, 0.0  ;;  %vm962_vm9 = vcmp.eq.f32.partialorder %v2433_v39, inf }
 0x10b   :  { %v607_v44 = vsel %vm606_vm11, %v2421_v5, %v605_v43  ;;  %v826_v35 = vmul.f32 0.5, %v825_v1  ;;  %v836_v5 = vmul.f32 %v1487_v8, %v2415_v60  ;;  %v848_v41 = vmul.f32 %v1489_v23, %v2428_v56 }
 0x10c   :  { %v610_v40 = vsel %vm608_vm12, %v609_v58, %v607_v44  ;;  %v2490_v7 = vpop.xlane.xlu0 %805  ;;  %v816_v2 = vmul.f32 %v1483_v32, %v815_v6  ;;  %1494 = vrsqrt.f32 %v2488_v51  ;;  %vm758_vm8 = vcmp.eq.f32.partialorder %v2488_v51, inf }
 0x10d   :  { %v2484_v30 = vadd.f32 %v610_v40, %v2292_v25  ;;  %v2496_v25 = vpop.eup %1490  ;;  %v827_v20 = vsub.f32 1.5, %v826_v35  ;;  %v837_v49 = vmul.f32 %v1487_v8, %v836_v5  ;;  %v849_v50 = vmul.f32 %v1489_v23, %v848_v41 }
 0x10e   :  { %v2498_v61 = vpop.eup %1492  ;;  %v968_v55 = vmul.f32 %v2496_v25, %v2437_v24  ;;  %v817_v12 = vmul.f32 %v816_v2, %v2338_v18  ;;  %1496 = vrsqrt.f32 %v2433_v39  ;;  %v857_v2 = vand.u32 2147483648, %v2428_v56 }
 0x10f   :  { %v740_v38 = vmul.f32 %v2498_v61, %v2454_v19  ;;  %v828_v53 = vmul.f32 %v1485_v34, %v827_v20  ;;  %v838_v3 = vmul.f32 0.5, %v837_v49  ;;  %v850_v32 = vmul.f32 0.5, %v849_v50 }
 0x110   :  { %1498 = vrsqrt.f32 %v2465_v33  ;;  %v969_v15 = vmul.f32 %v2496_v25, %v968_v55  ;;  %v819_v59 = vsel %vm818_vm13, %v2338_v18, %v817_v12  ;;  %v821_v34 = vand.u32 2147483648, %v2338_v18 }
 0x111   :  { %v741_v0 = vmul.f32 %v2498_v61, %v740_v38  ;;  %v2515_v21 = vpop.xlane.xlu1 %807  ;;  %1500 = vrsqrt.f32 %v2471_v13  ;;  %v829_v28 = vmul.f32 %v828_v53, %v2369_v63  ;;  %v839_v42 = vsub.f32 1.5, %v838_v3 }
 0x112   :  { %v2505_v62 = vpop.xlane.xlu2 %1083  ;;  %v2517_v36 = vpop.eup %1494  ;;  %v851_v22 = vsub.f32 1.5, %v850_v32  ;;  %1502 = vrsqrt.f32 %v2494_v48  ;;  %v970_v27 = vmul.f32 0.5, %v969_v15  ;;  %v2534_v11 = vsel %vm820_vm15, %v821_v34, %v819_v59 }
 0x113   :  { %v742_v31 = vmul.f32 0.5, %v741_v0  ;;  %1504 = vrsqrt.f32 %v2505_v62  ;;  %v752_v45 = vmul.f32 %v2517_v36, %v2488_v51  ;;  %v831_v43 = vsel %vm830_vm14, %v2369_v63, %v829_v28 }
 0x114   :  { %v2512_v9 = vpop.xlane.xlu0 %1085  ;;  %v2524_v37 = vpop.eup %1496  ;;  %1506 = vrsqrt.f32 %v2490_v7  ;;  %v840_v14 = vmul.f32 %v1487_v8, %v839_v42  ;;  %v852_v58 = vmul.f32 %v1489_v23, %v851_v22  ;;  %v971_v52 = vsub.f32 1.5, %v970_v27 }
 0x115   :  { %v956_v44 = vmul.f32 %v2524_v37, %v2433_v39  ;;  %v743_v1 = vsub.f32 1.5, %v742_v31  ;;  %1508 = vrsqrt.f32 %v2515_v21  ;;  %v845_v8 = vand.u32 2147483648, %v2415_v60 }
 0x116   :  { %v2528_v26 = vpop.eup %1498  ;;  %v753_v23 = vmul.f32 %v2517_v36, %v752_v45  ;;  %v2558_v41 = vsel %vm832_vm0, %v833_v29, %v831_v43  ;;  %v841_v50 = vmul.f32 %v840_v14, %v2415_v60  ;;  %v853_v55 = vmul.f32 %v852_v58, %v2428_v56 }
 0x117   :  { %v2543_v18 = vpop.eup %1500  ;;  %v860_v6 = vmul.f32 %v2528_v26, %v2465_v33  ;;  %v957_v63 = vmul.f32 %v2524_v37, %v956_v44  ;;  %v972_v53 = vmul.f32 %v2496_v25, %v971_v52  ;;  %v744_v3 = vmul.f32 %v2498_v61, %v743_v1 }
 0x118   :  { %v2548_v35 = vpop.eup %1502  ;;  %v980_v38 = vmul.f32 %v2543_v18, %v2471_v13  ;;  %v754_v0 = vmul.f32 0.5, %v753_v23  ;;  %v843_v28 = vsel %vm842_vm1, %v2415_v60, %v841_v50  ;;  %v855_v42 = vsel %vm854_vm3, %v2428_v56, %v853_v55 }
 0x119   :  { %v2554_v5 = vpop.eup %1504  ;;  %v2573_v12 = vpop.xlane.xlu1 %809  ;;  %v861_v32 = vmul.f32 %v2528_v26, %v860_v6  ;;  %v992_v59 = vmul.f32 %v2548_v35, %v2494_v48  ;;  %v958_v22 = vmul.f32 0.5, %v957_v63  ;;  %v973_v31 = vmul.f32 %v972_v53, %v2437_v24 }
 0x11a   :  { %v2541_v40 = vpop.xlane.xlu2 %947  ;;  %v2565_v49 = vpop.eup %1506  ;;  %v1100_v25 = vmul.f32 %v2554_v5, %v2505_v62  ;;  %v981_v27 = vmul.f32 %v2543_v18, %v980_v38  ;;  %v745_v45 = vmul.f32 %v744_v3, %v2454_v19  ;;  %v749_v29 = vand.u32 2147483648, %v2454_v19 }
 0x11b   :  { %1510 = vrsqrt.f32 %v2541_v40  ;;  %v2583_v34 = vpop.eup %1508  ;;  %v872_v61 = vmul.f32 %v2565_v49, %v2490_v7  ;;  %v862_v43 = vmul.f32 0.5, %v861_v32  ;;  %v755_v14 = vsub.f32 1.5, %v754_v0 }
 0x11c   :  { %v2563_v20 = vpop.xlane.xlu0 %1087  ;;  %1512 = vrsqrt.f32 %v2512_v9  ;;  %v993_v58 = vmul.f32 %v2548_v35, %v992_v59  ;;  %v884_v44 = vmul.f32 %v2583_v34, %v2515_v21  ;;  %v2611_v6 = vsel %vm844_vm2, %v845_v8, %v843_v28 }
 0x11d   :  { %1514 = vrsqrt.f32 %v2573_v12  ;;  %v2615_v23 = vsel %vm856_vm4, %v857_v2, %v855_v42  ;;  %v1101_v50 = vmul.f32 %v2554_v5, %v1100_v25  ;;  %v873_v55 = vmul.f32 %v2565_v49, %v872_v61 }
 0x11e   :  { %v959_v63 = vsub.f32 1.5, %v958_v22  ;;  %v965_v38 = vand.u32 2147483648, %v2433_v39  ;;  %v982_v53 = vmul.f32 0.5, %v981_v27  ;;  %v2626_v60 = vsel %vm974_vm5, %v2437_v24, %v973_v31 }
 0x11f   :  { %v747_v56 = vsel %vm746_vm6, %v2454_v19, %v745_v45  ;;  %v863_v8 = vsub.f32 1.5, %v862_v43  ;;  %v756_v0 = vmul.f32 %v2517_v36, %v755_v14  ;;  %v994_v59 = vmul.f32 0.5, %v993_v58 }
 0x120   :  { %v885_v25 = vmul.f32 %v2583_v34, %v884_v44  ;;  %vm760_vm10 = vcmp.eq.f32.partialorder %v2488_v51, 0.0  ;;  %v761_v42 = vand.u32 2147483648, %v2488_v51  ;;  %v1102_v22 = vmul.f32 0.5, %v1101_v50 }
 0x121   :  { %v2607_v1 = vpop.eup %1510  ;;  %v2638_v28 = vpop.xlane.xlu1 %951  ;;  %v874_v27 = vmul.f32 0.5, %v873_v55  ;;  %v960_v36 = vmul.f32 %v2524_v37, %v959_v63  ;;  %v983_v45 = vsub.f32 1.5, %v982_v53  ;;  %v750_v14 = vsel %vm748_vm7, %v749_v29, %v747_v56 }
 0x122   :  { %v2605_v52 = vpop.xlane.xlu2 %949  ;;  %v2621_v32 = vpop.eup %1512  ;;  %v1004_v61 = vmul.f32 %v2607_v1, %v2541_v40  ;;  %v864_v58 = vmul.f32 %v2528_v26, %v863_v8  ;;  %vm866_vm11 = vcmp.eq.f32.partialorder %v2465_v33, inf  ;;  %v869_v44 = vand.u32 2147483648, %v2465_v33 }
 0x123   :  { %v2643_v31 = vpop.eup %1514  ;;  %v1112_v43 = vmul.f32 %v2621_v32, %v2512_v9  ;;  %1516 = vrsqrt.f32 %v2605_v52  ;;  %v757_v55 = vmul.f32 %v756_v0, %v2488_v51  ;;  %v995_v37 = vsub.f32 1.5, %v994_v59 }
 0x124   :  { %v2632_v2 = vpop.xlane.xlu0 %1089  ;;  %v886_v63 = vmul.f32 0.5, %v885_v25  ;;  %v1005_v53 = vmul.f32 %v2607_v1, %v1004_v61  ;;  %vm986_vm12 = vcmp.eq.f32.partialorder %v2471_v13, inf  ;;  %v1103_v3 = vsub.f32 1.5, %v1102_v22 }
 0x125   :  { %v875_v15 = vsub.f32 1.5, %v874_v27  ;;  %v896_v19 = vmul.f32 %v2643_v31, %v2573_v12  ;;  %1518 = vrsqrt.f32 %v2632_v2  ;;  %v961_v26 = vmul.f32 %v960_v36, %v2433_v39 }
 0x126   :  { %v984_v29 = vmul.f32 %v2543_v18, %v983_v45  ;;  %v1113_v56 = vmul.f32 %v2621_v32, %v1112_v43  ;;  %1520 = vrsqrt.f32 %v2563_v20  ;;  %v2668_v0 = vadd.f32 %v750_v14, %v2469_v4 }
 0x127   :  { %v865_v59 = vmul.f32 %v864_v58, %v2465_v33  ;;  %vm868_vm13 = vcmp.eq.f32.partialorder %v2465_v33, 0.0  ;;  %vm1106_vm14 = vcmp.eq.f32.partialorder %v2505_v62, inf  ;;  %v1109_v25 = vand.u32 2147483648, %v2505_v62 }
 0x128   :  { %v759_v18 = vsel %vm758_vm8, %v2488_v51, %v757_v55  ;;  %v996_v22 = vmul.f32 %v2548_v35, %v995_v37  ;;  %vm998_vm15 = vcmp.eq.f32.partialorder %v2494_v48, inf  ;;  %vm878_vm0 = vcmp.eq.f32.partialorder %v2490_v7, inf }
 0x129   :  { %v2674_v61 = vpop.eup %1516  ;;  %v887_v4 = vsub.f32 1.5, %v886_v63  ;;  %v1006_v27 = vmul.f32 0.5, %v1005_v53  ;;  %v1104_v36 = vmul.f32 %v2554_v5, %v1103_v3  ;;  %v876_v45 = vmul.f32 %v2565_v49, %v875_v15 }
 0x12a   :  { %v2665_v8 = vpop.xlane.xlu2 %1091  ;;  %v881_v43 = vand.u32 2147483648, %v2490_v7  ;;  %v897_v14 = vmul.f32 %v2643_v31, %v896_v19  ;;  %v2691_v35 = vsel %vm962_vm9, %v2433_v39, %v961_v26  ;;  %v985_v55 = vmul.f32 %v984_v29, %v2471_v13 }
 0x12b   :  { %v1114_v37 = vmul.f32 0.5, %v1113_v56  ;;  %1522 = vrsqrt.f32 %v2638_v28  ;;  %v2697_v5 = vpop.eup %1518  ;;  %v762_v49 = vsel %vm760_vm10, %v761_v42, %v759_v18  ;;  %vm890_vm1 = vcmp.eq.f32.partialorder %v2515_v21, inf }
 0x12c   :  { %v893_v15 = vand.u32 2147483648, %v2515_v21  ;;  %v1016_v53 = vmul.f32 %v2674_v61, %v2605_v52  ;;  %v2706_v19 = vpop.eup %1520  ;;  %v867_v26 = vsel %vm866_vm11, %v2465_v33, %v865_v59  ;;  %v997_v29 = vmul.f32 %v996_v22, %v2494_v48 }
 0x12d   :  { %vm880_vm2 = vcmp.eq.f32.partialorder %v2490_v7, 0.0  ;;  %v888_v51 = vmul.f32 %v2583_v34, %v887_v4  ;;  %v1007_v42 = vsub.f32 1.5, %v1006_v27  ;;  %v1105_v56 = vmul.f32 %v1104_v36, %v2505_v62 }
 0x12e   :  { %v2695_v63 = vpop.xlane.xlu1 %1093  ;;  %v877_v18 = vmul.f32 %v876_v45, %v2490_v7  ;;  %vm1010_vm3 = vcmp.eq.f32.partialorder %v2541_v40, inf  ;;  %v898_v3 = vmul.f32 0.5, %v897_v14  ;;  %v2721_v59 = vsel %vm986_vm12, %v2471_v13, %v985_v55 }
 0x12f   :  { %1524 = vrsqrt.f32 %v2695_v63  ;;  %vm892_vm4 = vcmp.eq.f32.partialorder %v2515_v21, 0.0  ;;  %v1115_v22 = vsub.f32 1.5, %v1114_v37  ;;  %v1136_v4 = vmul.f32 %v2697_v5, %v2632_v2 }
 0x130   :  { %v2686_v58 = vpop.xlane.xlu0 %953  ;;  %vm964_vm5 = vcmp.eq.f32.partialorder %v2433_v39, 0.0  ;;  %v2729_v27 = vadd.f32 %v762_v49, %v2484_v30  ;;  %vm1108_vm6 = vcmp.eq.f32.partialorder %v2505_v62, 0.0  ;;  %v1017_v36 = vmul.f32 %v2674_v61, %v1016_v53 }
 0x131   :  { %v1124_v45 = vmul.f32 %v2706_v19, %v2563_v20  ;;  %1526 = vrsqrt.f32 %v2665_v8  ;;  %v2736_v14 = vpop.eup %1522  ;;  %v2742_v55 = vsel %vm868_vm13, %v869_v44, %v867_v26  ;;  %v889_v30 = vmul.f32 %v888_v51, %v2515_v21 }
 0x132   :  { %v1008_v37 = vmul.f32 %v2607_v1, %v1007_v42  ;;  %v2746_v49 = vpop.xlane.xlu2 %1095  ;;  %v2751_v53 = vsel %vm998_vm15, %v2494_v48, %v997_v29  ;;  %v1107_v50 = vsel %vm1106_vm14, %v2505_v62, %v1105_v56  ;;  %v879_v33 = vsel %vm878_vm0, %v2490_v7, %v877_v18 }
 0x133   :  { %vm1118_vm7 = vcmp.eq.f32.partialorder %v2512_v9, inf  ;;  %v899_v44 = vsub.f32 1.5, %v898_v3  ;;  %v1569_v26 = vmov 0   ;;  %v1116_v1 = vmul.f32 %v2621_v32, %v1115_v22 }
 0x134   :  { %1404 = vset.pattern.permute.xlu0 %v1569_v26  ;;  %1403 = vset.pattern.permute.xlu2 %v1569_v26  ;;  %v1137_v51 = vmul.f32 %v2697_v5, %v1136_v4  ;;  %v907_v29 = vadd.f32 %v2534_v11, %v2366_v47  ;;  %v1018_v56 = vmul.f32 0.5, %v1017_v36  ;;  %v1125_v34 = vmul.f32 %v2706_v19, %v1124_v45 }
 0x135   :  { %1405 = vset.pattern.permute.xlu1 %v1569_v26  ;;  %v2764_v42 = vpop.eup %1524  ;;  %v1028_v18 = vmul.f32 %v2736_v14, %v2638_v28  ;;  %1528 = vrsqrt.f32 %v2746_v49  ;;  %v891_v32 = vsel %vm890_vm1, %v2515_v21, %v889_v30  ;;  %v1009_v22 = vmul.f32 %v1008_v37, %v2541_v40 }
 0x136   :  { %vm902_vm8 = vcmp.eq.f32.partialorder %v2573_v12, inf  ;;  %1530 = vrsqrt.f32 %v2686_v58  ;;  %v2785_v4 = vsel %vm880_vm2, %v881_v43, %v879_v33  ;;  %v900_v36 = vmul.f32 %v2643_v31, %v899_v44 }
 0x137   :  { %v2779_v11 = vpop.eup %1526  ;;  %v1570_v30 = vmov 8.0   ;;  %v1117_v37 = vmul.f32 %v1116_v1, %v2512_v9  ;;  %v1138_v26 = vmul.f32 0.5, %v1137_v51  ;;  %v1160_v47 = vmul.f32 %v2764_v42, %v2695_v63 }
 0x138   :  { %v2770_v3 = vpop.xlane.xlu0 %1097  ;;  %1532 = vrcp.f32 %v1570_v30  ;;  %vm976_vm9 = vcmp.eq.f32.partialorder %v2437_v24, 0.0  ;;  %v2798_v7 = vsel %vm892_vm4, %v893_v15, %v891_v32  ;;  %v1019_v31 = vsub.f32 1.5, %v1018_v56 }
 0x139   :  { %1534 = vrsqrt.f32 %v2770_v3  ;;  %v1126_v43 = vmul.f32 0.5, %v1125_v34  ;;  %v1029_v33 = vmul.f32 %v2736_v14, %v1028_v18  ;;  %v2804_v44 = vsel %vm1010_vm3, %v2541_v40, %v1009_v22 }
 0x13a   :  { %vm904_vm10 = vcmp.eq.f32.partialorder %v2573_v12, 0.0  ;;  %vm1022_vm11 = vcmp.eq.f32.partialorder %v2605_v52, inf  ;;  %v1148_v21 = vmul.f32 %v2779_v11, %v2665_v8  ;;  %v966_v15 = vsel %vm964_vm5, %v965_v38, %v2691_v35 }
 0x13b   :  { %v2816_v34 = vpop.eup %1528  ;;  %v901_v51 = vmul.f32 %v900_v36, %v2573_v12  ;;  %v1119_v30 = vsel %vm1118_vm7, %v2512_v9, %v1117_v37  ;;  %v1139_v45 = vsub.f32 1.5, %v1138_v26  ;;  %v1161_v39 = vmul.f32 %v2764_v42, %v1160_v47 }
 0x13c   :  { %v2822_v22 = vpop.eup %1530  ;;  %v1110_v38 = vsel %vm1108_vm6, %v1109_v25, %v1107_v50  ;;  %vm1120_vm12 = vcmp.eq.f32.partialorder %v2512_v9, 0.0  ;;  %v1020_v36 = vmul.f32 %v2674_v61, %v1019_v31  ;;  %v1127_v56 = vsub.f32 1.5, %v1126_v43 }
 0x13d   :  { %v1030_v18 = vmul.f32 0.5, %v1029_v33  ;;  %v1051_v1 = vadd.f32 %v966_v15, %v907_v29  ;;  %vm1000_vm13 = vcmp.eq.f32.partialorder %v2494_v48, 0.0  ;;  %v1149_v37 = vmul.f32 %v2779_v11, %v1148_v21 }
 0x13e   :  { %v1533_v35 = vpop.eup %1532  ;;  %v1172_v62 = vmul.f32 %v2816_v34, %v2746_v49  ;;  %v903_v25 = vsel %vm902_vm8, %v2573_v12, %v901_v51  ;;  %vm1142_vm14 = vcmp.eq.f32.partialorder %v2632_v2, inf  ;;  %v1049_v29 = vand.u32 2147483648, %v2686_v58 }
 0x13f   :  { %v2834_v32 = vpop.eup %1534  ;;  %v1212_v50 = vmul.f32 8.0, %v1533_v35  ;;  %v1195_v26 = vadd.f32 %v1110_v38, %v1051_v1  ;;  %vm1130_vm15 = vcmp.eq.f32.partialorder %v2563_v20, inf  ;;  %v1140_v31 = vmul.f32 %v2697_v5, %v1139_v45 }
 0x140   :  { %v1162_v43 = vmul.f32 0.5, %v1161_v39  ;;  %v1040_v33 = vmul.f32 %v2822_v22, %v2686_v58  ;;  %vm988_vm0 = vcmp.eq.f32.partialorder %v2471_v13, 0.0  ;;  %v1021_v15 = vmul.f32 %v1020_v36, %v2605_v52 }
 0x141   :  { %v1213_v21 = vsub.f32 1.0, %v1212_v50  ;;  %v1128_v51 = vmul.f32 %v2706_v19, %v1127_v56  ;;  %v1031_v47 = vsub.f32 1.5, %v1030_v18  ;;  %v1184_v61 = vmul.f32 %v2834_v32, %v2770_v3 }
 0x142   :  { %v1150_v1 = vmul.f32 0.5, %v1149_v37  ;;  %vm1144_vm1 = vcmp.eq.f32.partialorder %v2632_v2, 0.0  ;;  %v1173_v5 = vmul.f32 %v2816_v34, %v1172_v62  ;;  %v3057_v39 = vand.u32 2147483648, %v2437_v24 }
 0x143   :  { %v1214_v45 = vmul.f32 %v1533_v35, %v1213_v21  ;;  %v3058_v36 = vand.u32 2147483648, %v2573_v12  ;;  %v1203_v56 = vsub.f32 0.0, %v1195_v26  ;;  %vm1216_vm2 = vweird.f32 %v1533_v35 }
 0x144   :  { %v978_v38 = vsel %vm976_vm9, %v3057_v39, %v2626_v60  ;;  %v908_v18 = vadd.f32 %v2558_v41, %v2383_v46  ;;  %vm1024_vm3 = vcmp.eq.f32.partialorder %v2605_v52, 0.0  ;;  %v1141_v37 = vmul.f32 %v1140_v31, %v2632_v2 }
 0x145   :  { %v2867_v19 = vsel %vm904_vm10, %v3058_v36, %v903_v25  ;;  %v1163_v62 = vsub.f32 1.5, %v1162_v43  ;;  %v1041_v50 = vmul.f32 %v2822_v22, %v1040_v33  ;;  %v1215_v24 = vadd.f32 %v1533_v35, %v1214_v45 }
 0x146   :  { %v1023_v60 = vsel %vm1022_vm11, %v2605_v52, %v1021_v15  ;;  %v1129_v12 = vmul.f32 %v1128_v51, %v2563_v20  ;;  %vm1132_vm4 = vcmp.eq.f32.partialorder %v2563_v20, 0.0  ;;  %v1185_v25 = vmul.f32 %v2834_v32, %v1184_v61 }
 0x147   :  { %v1052_v26 = vadd.f32 %v978_v38, %v908_v18  ;;  %v1151_v46 = vsub.f32 1.5, %v1150_v1  ;;  %v1174_v41 = vmul.f32 0.5, %v1173_v5  ;;  %v2882_v31 = vsel %vm1216_vm2, %v1533_v35, %v1215_v24 }
 0x148   :  { %v3059_v43 = vand.u32 2147483648, %v2512_v9  ;;  %vm1012_vm5 = vcmp.eq.f32.partialorder %v2541_v40, 0.0  ;;  %v1032_v15 = vmul.f32 %v2736_v14, %v1031_v47  ;;  %vm1154_vm6 = vcmp.eq.f32.partialorder %v2665_v8, inf }
 0x149   :  { %vm1166_vm7 = vcmp.eq.f32.partialorder %v2695_v63, inf  ;;  %v1218_v61 = vmul.f32 %v2882_v31, %v1203_v56  ;;  %v3060_v35 = vand.u32 2147483648, %v2494_v48  ;;  %v1143_v9 = vsel %vm1142_vm14, %v2632_v2, %v1141_v37 }
 0x14a   :  { %v1122_v33 = vsel %vm1120_vm12, %v3059_v43, %v1119_v30  ;;  %v1164_v30 = vmul.f32 %v2764_v42, %v1163_v62  ;;  %v1042_v14 = vmul.f32 0.5, %v1041_v50  ;;  %v910_v47 = vadd.f32 %v2615_v23, %v2446_v54 }
 0x14b   :  { %v1196_v51 = vadd.f32 %v1122_v33, %v1052_v26  ;;  %v1002_v1 = vsel %vm1000_vm13, %v3060_v35, %v2751_v53  ;;  %v1131_v5 = vsel %vm1130_vm15, %v2563_v20, %v1129_v12  ;;  %v1186_v45 = vmul.f32 0.5, %v1185_v25 }
 0x14c   :  { %v1152_v53 = vmul.f32 %v2779_v11, %v1151_v46  ;;  %vm1168_vm8 = vcmp.eq.f32.partialorder %v2695_v63, 0.0  ;;  %v1175_v38 = vsub.f32 1.5, %v1174_v41  ;;  %v1054_v36 = vadd.f32 %v1002_v1, %v910_v47 }
 0x14d   :  { %v2880_v21 = vpop.permute.xlu1 %1235  ;;  %v1204_v48 = vsub.f32 0.0, %v1196_v51  ;;  %v3061_v42 = vand.u32 2147483648, %v2471_v13  ;;  %vm1156_vm9 = vcmp.eq.f32.partialorder %v2665_v8, 0.0  ;;  %v3062_v18 = vand.u32 2147483648, %v2632_v2 }
 0x14e   :  { %v2908_v39 = vmul.f32 %v2880_v21, %v1218_v61  ;;  %v909_v37 = vadd.f32 %v2611_v6, %v2402_v10  ;;  %v1033_v62 = vmul.f32 %v1032_v15, %v2638_v28  ;;  %v1165_v50 = vmul.f32 %v1164_v30, %v2695_v63 }
 0x14f   :  { %v990_v54 = vsel %vm988_vm0, %v3061_v42, %v2721_v59  ;;  %v1219_v56 = vmul.f32 %v2882_v31, %v1204_v48  ;;  %v1146_v11 = vsel %vm1144_vm1, %v3062_v18, %v1143_v9  ;;  %v1043_v13 = vsub.f32 1.5, %v1042_v14 }
 0x150   :  { %v1262_v23 = vand.u32 2147483647, %v2908_v39  ;;  %v1198_v59 = vadd.f32 %v1146_v11, %v1054_v36  ;;  %v1187_v24 = vsub.f32 1.5, %v1186_v45  ;;  %v1053_v26 = vadd.f32 %v990_v54, %v909_v37 }
 0x151   :  { %v2929_v25 = vmul.f32 %v2880_v21, %v1219_v56  ;;  %vm1034_vm10 = vcmp.eq.f32.partialorder %v2638_v28, inf  ;;  %v1153_v2 = vmul.f32 %v1152_v53, %v2665_v8  ;;  %v1176_v46 = vmul.f32 %v2816_v34, %v1175_v38 }
 0x152   :  { %v1270_v12 = vsub.f32 0.0, %v1262_v23  ;;  %vm1178_vm11 = vcmp.eq.f32.partialorder %v2746_v49, inf  ;;  %v1206_v10 = vsub.f32 0.0, %v1198_v59  ;;  %v3063_v6 = vand.u32 2147483648, %v2563_v20 }
 0x153   :  { %vm1046_vm12 = vcmp.eq.f32.partialorder %v2686_v58, inf  ;;  %v1263_v33 = vand.u32 2147483647, %v2929_v25  ;;  %v3064_v61 = vand.u32 2147483648, %v2605_v52  ;;  %v1167_v34 = vsel %vm1166_vm7, %v2695_v63, %v1165_v50 }
 0x154   :  { %v1134_v41 = vsel %vm1132_vm4, %v3063_v6, %v1131_v5  ;;  %v1278_v43 = vmul.f32 1.442695, %v1270_v12  ;;  %v1044_v35 = vmul.f32 %v2822_v22, %v1043_v13  ;;  %vm1190_vm13 = vcmp.eq.f32.partialorder %v2770_v3, inf }
 0x155   :  { %v1197_v15 = vadd.f32 %v1134_v41, %v1053_v26  ;;  %v1026_v51 = vsel %vm1024_vm3, %v3064_v61, %v1023_v60  ;;  %v1221_v20 = vmul.f32 %v2882_v31, %v1206_v10  ;;  %v912_v1 = vadd.f32 %v2785_v4, %v2474_v57 }
 0x156   :  { %vm1036_vm14 = vcmp.eq.f32.partialorder %v2638_v28, 0.0  ;;  %v1188_v9 = vmul.f32 %v2834_v32, %v1187_v24  ;;  %1536 = vpow2.f32 %v1278_v43  ;;  %v1271_v52 = vsub.f32 0.0, %v1263_v33 }
 0x157   :  { %v1205_v60 = vsub.f32 0.0, %v1197_v15  ;;  %v1155_v30 = vsel %vm1154_vm6, %v2665_v8, %v1153_v2  ;;  %vm1048_vm15 = vcmp.eq.f32.partialorder %v2686_v58, 0.0  ;;  %v2960_v22 = vmul.f32 %v2880_v21, %v1221_v20 }
 0x158   :  { %v1056_v14 = vadd.f32 %v1026_v51, %v912_v1  ;;  %v3065_v57 = vand.u32 2147483648, %v2541_v40  ;;  %v1280_v32 = vmul.f32 1.442695, %v1271_v52  ;;  %v3066_v5 = vand.u32 2147483648, %v2695_v63 }
 0x159   :  { %v1220_v47 = vmul.f32 %v2882_v31, %v1205_v60  ;;  %v911_v48 = vadd.f32 %v2742_v55, %v2451_v17  ;;  %v1177_v53 = vmul.f32 %v1176_v46, %v2746_v49  ;;  %vm1180_vm0 = vcmp.eq.f32.partialorder %v2746_v49, 0.0 }
 0x15a   :  { %v1014_v4 = vsel %vm1012_vm5, %v3065_v57, %v2804_v44  ;;  %v1170_v45 = vsel %vm1168_vm8, %v3066_v5, %v1167_v34  ;;  %v1045_v38 = vmul.f32 %v1044_v35, %v2686_v58  ;;  %v1265_v40 = vand.u32 2147483647, %v2960_v22 }
 0x15b   :  { %v1200_v44 = vadd.f32 %v1170_v45, %v1056_v14  ;;  %v1189_v36 = vmul.f32 %v1188_v9, %v2770_v3  ;;  %1538 = vpow2.f32 %v1280_v32  ;;  %v2980_v42 = vmul.f32 %v2880_v21, %v1220_v47 }
 0x15c   :  { %v1055_v63 = vadd.f32 %v1014_v4, %v911_v48  ;;  %vm1192_vm1 = vcmp.eq.f32.partialorder %v2770_v3, 0.0  ;;  %v1273_v54 = vsub.f32 0.0, %v1265_v40  ;;  %v3067_v55 = vand.u32 2147483648, %v2665_v8  ;;  %v1537_v56 = vpop.eup %1536 }
 0x15d   :  { %v1208_v17 = vsub.f32 0.0, %v1200_v44  ;;  %v1035_v18 = vsel %vm1034_vm10, %v2638_v28, %v1033_v62  ;;  %v1193_v11 = vand.u32 2147483648, %v2770_v3  ;;  %v1264_v37 = vand.u32 2147483647, %v2980_v42 }
 0x15e   :  { %v1158_v23 = vsel %vm1156_vm9, %v3067_v55, %v1155_v30  ;;  %v1047_v13 = vsel %vm1046_vm12, %v2686_v58, %v1045_v38  ;;  %v1294_v59 = vadd.f32 1.0, %v1537_v56  ;;  %v1284_v24 = vmul.f32 1.442695, %v1273_v54 }
 0x15f   :  { %v1199_v50 = vadd.f32 %v1158_v23, %v1055_v63  ;;  %v1223_v12 = vmul.f32 %v2882_v31, %v1208_v17  ;;  %v1179_v8 = vsel %vm1178_vm11, %v2746_v49, %v1177_v53  ;;  %v1191_v62 = vsel %vm1190_vm13, %v2770_v3, %v1189_v36 }
 0x160   :  { %v1272_v26 = vsub.f32 0.0, %v1264_v37  ;;  %1540 = vlog2.f32 %v1294_v59  ;;  %v914_v10 = vadd.f32 %v2867_v19, %v2729_v27  ;;  %v3068_v6 = vand.u32 2147483648, %v2638_v28 }
 0x161   :  { %v1207_v2 = vsub.f32 0.0, %v1199_v50  ;;  %v3003_v46 = vmul.f32 %v2880_v21, %v1223_v12  ;;  %v1539_v43 = vpop.eup %1538  ;;  %1542 = vpow2.f32 %v1284_v24  ;;  %v1050_v61 = vsel %vm1048_vm15, %v1049_v29, %v1047_v13 }
 0x162   :  { %v1038_v41 = vsel %vm1036_vm14, %v3068_v6, %v1035_v18  ;;  %v1282_v33 = vmul.f32 1.442695, %v1272_v26  ;;  %v1295_v51 = vadd.f32 1.0, %v1539_v43  ;;  %v1058_v35 = vadd.f32 %v1050_v61, %v914_v10 }
 0x163   :  { %v1222_v15 = vmul.f32 %v2882_v31, %v1207_v2  ;;  %v1267_v34 = vand.u32 2147483647, %v3003_v46  ;;  %v913_v27 = vadd.f32 %v2798_v7, %v2668_v0  ;;  %v1246_v28 = vsub.f32 0.0, %v2908_v39 }
 0x164   :  { %1544 = vpow2.f32 %v1282_v33  ;;  %v1194_v20 = vsel %vm1192_vm1, %v1193_v11, %v1191_v62  ;;  %v3069_v52 = vand.u32 2147483648, %v2746_v49  ;;  %v1247_v3 = vsub.f32 0.0, %v2929_v25 }
 0x165   :  { %v3021_v19 = vmul.f32 %v2880_v21, %v1222_v15  ;;  %1546 = vlog2.f32 %v1295_v51  ;;  %v1275_v1 = vsub.f32 0.0, %v1267_v34  ;;  %v1202_v58 = vadd.f32 %v1194_v20, %v1058_v35 }
 0x166   :  { %v1057_v29 = vadd.f32 %v1038_v41, %v913_v27  ;;  %v1182_v0 = vsel %vm1180_vm0, %v3069_v52, %v1179_v8  ;;  %v1541_v7 = vpop.eup %1540  ;;  %v1254_v57 = vmax.f32 %v1246_v28, 0.0  ;;  %v1255_v54 = vmax.f32 %v1247_v3, 0.0 }
 0x167   :  { %v1266_v9 = vand.u32 2147483647, %v3021_v19  ;;  %v1288_v39 = vmul.f32 1.442695, %v1275_v1  ;;  %v1210_v60 = vsub.f32 0.0, %v1202_v58  ;;  %v1543_v14 = vpop.eup %1542  ;;  %v1249_v56 = vsub.f32 0.0, %v2960_v22 }
 0x168   :  { %v1201_v30 = vadd.f32 %v1182_v0, %v1057_v29  ;;  %v1303_v4 = vmul.f32 0.6931472, %v1541_v7  ;;  %v1297_v47 = vadd.f32 1.0, %v1543_v14  ;;  %v1248_v13 = vsub.f32 0.0, %v2980_v42 }
 0x169   :  { %v1274_v32 = vsub.f32 0.0, %v1266_v9  ;;  %1548 = vpow2.f32 %v1288_v39  ;;  %v1225_v5 = vmul.f32 %v2882_v31, %v1210_v60  ;;  %v1257_v62 = vmax.f32 %v1249_v56, 0.0 }
 0x16a   :  { %v1209_v45 = vsub.f32 0.0, %v1201_v30  ;;  %v1545_v48 = vpop.eup %1544  ;;  %v1318_v53 = vadd.f32 %v1303_v4, %v1254_v57  ;;  %1550 = vlog2.f32 %v1297_v47  ;;  %v1256_v6 = vmax.f32 %v1248_v13, 0.0 }
 0x16b   :  { %v1286_v38 = vmul.f32 1.442695, %v1274_v32  ;;  %v1547_v49 = vpop.eup %1546  ;;  %v1296_v40 = vadd.f32 1.0, %v1545_v48  ;;  %v3033_v44 = vmul.f32 %v2880_v21, %v1225_v5  ;;  %v1251_v43 = vsub.f32 0.0, %v3003_v46 }
 0x16c   :  { %v1224_v36 = vmul.f32 %v2882_v31, %v1209_v45  ;;  %v1326_v63 = vsub.f32 0.0, %v1318_v53  ;;  %v1305_v25 = vmul.f32 0.6931472, %v1547_v49  ;;  %v1250_v51 = vsub.f32 0.0, %v3021_v19 }
 0x16d   :  { %1552 = vpow2.f32 %v1286_v38  ;;  %v1269_v17 = vand.u32 2147483647, %v3033_v44  ;;  %v1259_v35 = vmax.f32 %v1251_v43, 0.0  ;;  %v1253_v7 = vsub.f32 0.0, %v3033_v44 }
 0x16e   :  { %1554 = vlog2.f32 %v1296_v40  ;;  %v1244_v55 = vmul.f32 %v2880_v21, %v1224_v36  ;;  %1343 = vperm.xlu2 %1403, %v1326_v63   ;;  %v1319_v23 = vadd.f32 %v1305_v25, %v1255_v54  ;;  %v1258_v29 = vmax.f32 %v1250_v51, 0.0 }
 0x16f   :  { %v1549_v18 = vpop.eup %1548  ;;  %v1277_v11 = vsub.f32 0.0, %v1269_v17  ;;  %v1261_v30 = vmax.f32 %v1253_v7, 0.0  ;;  %vm1374_vm2 = vcmask 1041409   ;;  %vm1376_vm3 = vcmask 1042434  }
 0x170   :  { %v1268_v37 = vand.u32 2147483647, %v1244_v55  ;;  %v1327_v50 = vsub.f32 0.0, %v1319_v23  ;;  %v1299_v31 = vadd.f32 1.0, %v1549_v18  ;;  %v1551_v59 = vpop.eup %1550  ;;  %v1252_v60 = vsub.f32 0.0, %v1244_v55 }
 0x171   :  { %v1292_v24 = vmul.f32 1.442695, %v1277_v11  ;;  %v1309_v26 = vmul.f32 0.6931472, %v1551_v59  ;;  %vm1378_vm4 = vcmask 1043459   ;;  %vm1380_vm5 = vcmask 1044484  }
 0x172   :  { %v1276_v12 = vsub.f32 0.0, %v1268_v37  ;;  %1346 = vperm.xlu0 %1404, %v1327_v50   ;;  %1556 = vlog2.f32 %v1299_v31  ;;  %v1260_v3 = vmax.f32 %v1252_v60, 0.0  ;;  %vm1382_vm6 = vcmask 1045509  }
 0x173   :  { %v1553_v8 = vpop.eup %1552  ;;  %1558 = vpow2.f32 %v1292_v24  ;;  %v1321_v22 = vadd.f32 %v1309_v26, %v1257_v62  ;;  %vm1384_vm7 = vcmask 1046534   ;;  %vm1386_vm8 = vcmask 1047559  }
 0x174   :  { %v1555_v21 = vpop.eup %1554  ;;  %v1298_v2 = vadd.f32 1.0, %v1553_v8  ;;  %v1290_v10 = vmul.f32 1.442695, %v1276_v12  ;;  %vm1389_vm9 = vcmask 64512   ;;  %vm1393_vm10 = vcmask 7168  }
 0x175   :  { %v1307_v41 = vmul.f32 0.6931472, %v1555_v21  ;;  %v1329_v42 = vsub.f32 0.0, %v1321_v22 }
 0x176   :  { %1560 = vlog2.f32 %v1298_v2 }
 0x177   :  { %v1320_v33 = vadd.f32 %v1307_v41, %v1256_v6  ;;  %1562 = vpow2.f32 %v1290_v10  ;;  %1352 = vperm.xlu1 %1405, %v1329_v42  }
 0x178   :  { %v1557_v15 = vpop.eup %1556 }
 0x179   :  { %v1328_v61 = vsub.f32 0.0, %v1320_v33  ;;  %v1559_v34 = vpop.eup %1558  ;;  %v1313_v27 = vmul.f32 0.6931472, %v1557_v15 }
 0x17a   :  { %v1301_v28 = vadd.f32 1.0, %v1559_v34 }
 0x17b   :  { %1349 = vperm.xlu2 %1403, %v1328_v61   ;;  %v1323_v1 = vadd.f32 %v1313_v27, %v1259_v35 }
 0x17c   :  { %v1561_v20 = vpop.eup %1560  ;;  %1564 = vlog2.f32 %v1301_v28 }
 0x17d   :  { %v1563_v58 = vpop.eup %1562  ;;  %v1311_v9 = vmul.f32 0.6931472, %v1561_v20  ;;  %v1331_v52 = vsub.f32 0.0, %v1323_v1 }
 0x17e   :  { %v1300_v46 = vadd.f32 1.0, %v1563_v58 }
 0x17f   :  { %v1322_v0 = vadd.f32 %v1311_v9, %v1258_v29  ;;  %1358 = vperm.xlu1 %1405, %v1331_v52  }
 0x180   :  { %1566 = vlog2.f32 %v1300_v46 }
 0x181   :  { %v1330_v39 = vsub.f32 0.0, %v1322_v0 }
 0x182   :  { %v1565_v19 = vpop.eup %1564 }
 0x183   :  { %1355 = vperm.xlu2 %1403, %v1330_v39   ;;  %v1317_v14 = vmul.f32 0.6931472, %v1565_v19 }
 0x185   :  { %v1325_v4 = vadd.f32 %v1317_v14, %v1261_v30 }
 0x186   :  { %v1567_v57 = vpop.eup %1566 }
 0x187   :  { %v1315_v32 = vmul.f32 0.6931472, %v1567_v57  ;;  %v1333_v47 = vsub.f32 0.0, %v1325_v4 }
 0x189   :  { %v1324_v5 = vadd.f32 %v1315_v32, %v1260_v3  ;;  %1364 = vperm.xlu1 %1405, %v1333_v47  }
 0x18b   :  { %v1332_v45 = vsub.f32 0.0, %v1324_v5 }
 0x18d   :  { %1361 = vperm.xlu2 %1403, %v1332_v45  }
 0x1c8   :  { %v1344_v48 = vpop.permute.xlu2 %1343 }
 0x1c9   :  { %v1366_v44 = vperm.slane %v1344_v48, %v2252_v16 }
 0x1d5   :  { %v1350_v53 = vpop.permute.xlu2 %1349 }
 0x1d6   :  { %v1368_v54 = vperm.slane %v1350_v53, %v2252_v16 }
 0x1dd   :  { %v1356_v36 = vpop.permute.xlu2 %1355 }
 0x1de   :  { %v1370_v18 = vperm.slane %v1356_v36, %v2252_v16 }
 0x1e4   :  { %v1347_v38 = vpop.permute.xlu0 %1346 }
 0x1e5   :  { %v1367_v40 = vperm.slane %v1347_v38, %v2252_v16 }
 0x1e7   :  { %v1375_v63 = vsel %vm1374_vm2, %v1367_v40, %v1366_v44  ;;  %v1362_v11 = vpop.permute.xlu2 %1361 }
 0x1e8   :  { %v1377_v17 = vsel %vm1376_vm3, %v1368_v54, %v1375_v63  ;;  %v1372_v13 = vperm.slane %v1362_v11, %v2252_v16 }
 0x1e9   :  { %v1353_v49 = vpop.permute.xlu1 %1352 }
 0x1ea   :  { %v1369_v55 = vperm.slane %v1353_v49, %v2252_v16 }
 0x1ec   :  { %v1379_v56 = vsel %vm1378_vm4, %v1369_v55, %v1377_v17 }
 0x1ed   :  { %v1381_v37 = vsel %vm1380_vm5, %v1370_v18, %v1379_v56 }
 0x1f1   :  { %v1359_v25 = vpop.permute.xlu1 %1358 }
 0x1f2   :  { %v1371_v23 = vperm.slane %v1359_v25, %v2252_v16 }
 0x1f4   :  { %v1383_v50 = vsel %vm1382_vm6, %v1371_v23, %v1381_v37 }
 0x1f5   :  { %v1385_v24 = vsel %vm1384_vm7, %v1372_v13, %v1383_v50 }
 0x1fb   :  { %v1365_v31 = vpop.permute.xlu1 %1364 }
 0x1fc   :  { %v1373_v59 = vperm.slane %v1365_v31, %v2252_v16 }
 0x1fe   :  { %v1387_v12 = vsel %vm1386_vm8, %v1373_v59, %v1385_v24 }
 0x1ff   :  { %v1390_v8 = vsel %vm1389_vm9, %v1387_v12, 0.0 }
 0x200   :  { %1391 = vadd.xlane.f32.xlu0 %v1390_v8 }
 0x273   :  { %v1392_v62 = vpop.xlane.xlu0 %1391 }
 0x274   :  { %1394 = vst.msk [vmem:[%s3056_s2] sm:$0xff] %vm1393_vm10, %v1392_v62 }

</bundles_post_ra>
